<compile_context>
chip_gen: v6e
topology: v6e:2x2x1
jax: 0.10.0
libtpu: 0.0.40
codegen_flags: <defaults>
</compile_context>

<pallas_src>
import math

import jax
import jax.numpy as jnp
from jax import lax
from jax.experimental import pallas as pl
from jax.experimental.pallas import tpu as pltpu

NUM_CHARS = 47      # alphabet size (one-hot width)
HIDDEN = 128        # GRU hidden size
NUM_LANGS = 5       # English, Spanish, Finnish, Dutch, Polish


def _gru_lid_kernel(idx_ref, wih_ref, whh_ref, bgi_ref, bhn_ref, wout_ref, bout_ref,
                    o_ref, gi_ref):
    """Whole-word GRU for one batch tile; grid = (batch_tiles,)."""
    lt = idx_ref.shape[1]          # L * TB
    tb = o_ref.shape[0]            # batch-tile rows
    seq_len = lt // tb

    # ---- hoisted input projection (independent of h): one big-M matmul -------
    idx = idx_ref[0]                                            # (L*TB, 1) int32
    lanes = lax.broadcasted_iota(jnp.int32, (lt, NUM_CHARS), 1)
    onehot = (lanes == idx).astype(jnp.bfloat16)                # exact one-hot
    gi = jnp.dot(onehot, wih_ref[...], preferred_element_type=jnp.float32)
    gi_ref[...] = gi + bgi_ref[...]       # b_ih + [b_hr, b_hz, 0] already folded

    b_hn = bhn_ref[...]                                         # (1, H) f32

    # ---- serial recurrence: only h @ W_hh + gate math on the critical path ---
    def step(t, h):
        start = pl.multiple_of(t * tb, tb)
        i_t = gi_ref[pl.ds(start, tb), :]                       # (TB, 3H) f32
        h_bf = h.astype(jnp.bfloat16)
        g_r = jnp.dot(h_bf, whh_ref[:, :HIDDEN],
                      preferred_element_type=jnp.float32)
        g_z = jnp.dot(h_bf, whh_ref[:, HIDDEN:2 * HIDDEN],
                      preferred_element_type=jnp.float32)
        g_n = jnp.dot(h_bf, whh_ref[:, 2 * HIDDEN:],
                      preferred_element_type=jnp.float32)
        r = jax.nn.sigmoid(i_t[:, :HIDDEN] + g_r)
        z = jax.nn.sigmoid(i_t[:, HIDDEN:2 * HIDDEN] + g_z)
        n = jnp.tanh(i_t[:, 2 * HIDDEN:] + r * (g_n + b_hn))    # PyTorch bias placement
        return (1.0 - z) * n + z * h                            # f32 state update

    h0 = jnp.zeros((tb, HIDDEN), jnp.float32)
    h_last = lax.fori_loop(0, seq_len, step, h0, unroll=seq_len <= 32)

    # ---- final hidden -> language logits --------------------------------------
    logits = jnp.dot(h_last.astype(jnp.bfloat16), wout_ref[...],
                     preferred_element_type=jnp.float32) + bout_ref[...]
    o_ref[...] = logits.astype(o_ref.dtype)


def _round_up(x, m):
    return (x + m - 1) // m * m


def language_id_forward_from_indices(char_idx, params):
    """char_idx: (L, B) int character indices. Returns (B, NUM_LANGS) f32 logits."""
    L, B = char_idx.shape

    # Batch tiling: >= 2 tiles when B is big enough so both v7x TensorCores get
    # work ("parallel" grid axis); TB is a multiple of 8 (sublane alignment).
    if B <= 16:
        TB = max(8, _round_up(B, 8))
    else:
        TB = min(128, _round_up(pl.cdiv(B, 2), 8))
    nb = pl.cdiv(B, TB)
    b_pad = nb * TB
    if b_pad != B:
        char_idx = jnp.pad(char_idx, ((0, 0), (0, b_pad - B)))  # garbage rows sliced off

    # (L, B_pad) -> (nb, L*TB, 1): per tile, rows [t*TB : (t+1)*TB] are time step t.
    idx = (char_idx.astype(jnp.int32)
           .reshape(L, nb, TB)
           .transpose(1, 0, 2)
           .reshape(nb, L * TB, 1))

    wih = params["w_ih"].astype(jnp.bfloat16)                   # (C, 3H)
    whh = params["w_hh"].astype(jnp.bfloat16)                   # (H, 3H)
    wout = params["w_out"].astype(jnp.bfloat16)                 # (H, 5)
    b_ih = params["b_ih"].astype(jnp.float32)
    b_hh = params["b_hh"].astype(jnp.float32)
    # Fold r/z halves of b_hh into the hoisted input bias; only b_hn stays in-loop.
    b_gi = (b_ih + jnp.concatenate(
        [b_hh[:2 * HIDDEN], jnp.zeros((HIDDEN,), jnp.float32)])).reshape(1, 3 * HIDDEN)
    b_hn = b_hh[2 * HIDDEN:].reshape(1, HIDDEN)
    bout = params["b_out"].reshape(1, NUM_LANGS).astype(jnp.float32)

    def resident(shape):   # weights/biases: constant index map -> stay in VMEM
        return pl.BlockSpec(shape, lambda b, _n=len(shape): (0,) * _n)

    logits = pl.pallas_call(
        _gru_lid_kernel,
        out_shape=jax.ShapeDtypeStruct((b_pad, NUM_LANGS), jnp.float32),
        grid=(nb,),
        in_specs=[
            pl.BlockSpec((1, L * TB, 1), lambda b: (b, 0, 0)),  # char indices per tile
            resident((NUM_CHARS, 3 * HIDDEN)),
            resident((HIDDEN, 3 * HIDDEN)),
            resident((1, 3 * HIDDEN)),
            resident((1, HIDDEN)),
            resident((HIDDEN, NUM_LANGS)),
            resident((1, NUM_LANGS)),
        ],
        out_specs=pl.BlockSpec((TB, NUM_LANGS), lambda b: (b, 0)),
        scratch_shapes=[pltpu.VMEM((L * TB, 3 * HIDDEN), jnp.float32)],  # hoisted GI
        compiler_params=pltpu.CompilerParams(
            dimension_semantics=("parallel",)),
    )(idx, wih, whh, b_gi, b_hn, wout, bout)

    return logits[:B]


def language_id_forward(xs, params):
    """xs: (L, B, NUM_CHARS) one-hot chars (torch batch_first=False layout).

    Matches `self.outputlayer(self.rnn(xs)[1][-1])` of the PyTorch module.
    One-hots are converted to int indices in the wrapper so the kernel streams
    4 B/char instead of 94 B/char.
    """
    L, B, C = xs.shape
    assert C == NUM_CHARS
    char_idx = jnp.argmax(xs, axis=-1).astype(jnp.int32)        # exact for one-hots
    return language_id_forward_from_indices(char_idx, params)


def init_params(key):
    """Matches torch defaults: GRU params ~ U(-1/sqrt(H), 1/sqrt(H)),
    Linear ~ U(-1/sqrt(fan_in), 1/sqrt(fan_in)). Matmul weights stored
    transposed (in, out) and cast to bf16 for the MXU."""
    ks = jax.random.split(key, 6)
    k = 1.0 / math.sqrt(HIDDEN)
    w_ih = jax.random.uniform(ks[0], (NUM_CHARS, 3 * HIDDEN), jnp.float32, -k, k)
    w_hh = jax.random.uniform(ks[1], (HIDDEN, 3 * HIDDEN), jnp.float32, -k, k)
    b_ih = jax.random.uniform(ks[2], (3 * HIDDEN,), jnp.float32, -k, k)
    b_hh = jax.random.uniform(ks[3], (3 * HIDDEN,), jnp.float32, -k, k)
    w_out = jax.random.uniform(ks[4], (HIDDEN, NUM_LANGS), jnp.float32, -k, k)
    b_out = jax.random.uniform(ks[5], (NUM_LANGS,), jnp.float32, -k, k)
    return {
        "w_ih": w_ih.astype(jnp.bfloat16),
        "w_hh": w_hh.astype(jnp.bfloat16),
        "b_ih": b_ih,
        "b_hh": b_hh,
        "w_out": w_out.astype(jnp.bfloat16),
        "b_out": b_out,
    }


def reference_forward(xs, params):
    """Plain-JAX GRU + Linear using the same bf16-weight / f32-accumulate math.
    (h is re-cast to bf16 each step, like the kernel, so results drift slightly
    from a pure-f32 PyTorch GRU for long words — acceptable for LID.)"""
    L, B, _ = xs.shape
    wih = params["w_ih"].astype(jnp.float32)
    whh = params["w_hh"].astype(jnp.float32)
    bih = params["b_ih"]
    bhh = params["b_hh"]
    wout = params["w_out"].astype(jnp.float32)
    bout = params["b_out"]
    h = jnp.zeros((B, HIDDEN), jnp.float32)
    for t in range(L):
        x = xs[t].astype(jnp.bfloat16).astype(jnp.float32)
        gi = x @ wih + bih
        gh = h.astype(jnp.bfloat16).astype(jnp.float32) @ whh + bhh
        r = jax.nn.sigmoid(gi[:, :HIDDEN] + gh[:, :HIDDEN])
        z = jax.nn.sigmoid(gi[:, HIDDEN:2 * HIDDEN] + gh[:, HIDDEN:2 * HIDDEN])
        n = jnp.tanh(gi[:, 2 * HIDDEN:] + r * gh[:, 2 * HIDDEN:])
        h = (1.0 - z) * n + z * h
    return h.astype(jnp.bfloat16).astype(jnp.float32) @ wout + bout


if __name__ == "__main__":
    key = jax.random.PRNGKey(0)
    k_params, k_idx1, k_idx2 = jax.random.split(key, 3)
    params = init_params(k_params)

    # Test 1: batch of 8 words, 8 characters each (single batch tile).
    seq_len, batch = 8, 8
    char_idx = jax.random.randint(k_idx1, (seq_len, batch), 0, NUM_CHARS)
    xs = jax.nn.one_hot(char_idx, NUM_CHARS, dtype=jnp.float32)     # (L, B, 47)
    logits = jax.block_until_ready(language_id_forward(xs, params))
    ref = reference_forward(xs, params)
    assert logits.shape == (batch, NUM_LANGS)
    assert jnp.allclose(logits, ref, atol=5e-3, rtol=5e-3), (
        f"max abs err = {jnp.max(jnp.abs(logits - ref))}")

    # Test 2: batch of 20 words, 12 characters each (2 batch tiles + padding).
    seq_len2, batch2 = 12, 20
    char_idx2 = jax.random.randint(k_idx2, (seq_len2, batch2), 0, NUM_CHARS)
    xs2 = jax.nn.one_hot(char_idx2, NUM_CHARS, dtype=jnp.float32)
    logits2 = jax.block_until_ready(language_id_forward(xs2, params))
    ref2 = reference_forward(xs2, params)
    assert logits2.shape == (batch2, NUM_LANGS)
    assert jnp.allclose(logits2, ref2, atol=5e-3, rtol=5e-3), (
        f"max abs err = {jnp.max(jnp.abs(logits2 - ref2))}")

    print("KERNEL_OK")
</pallas_src>

<mosaic_0001>
module attributes {stable_mosaic.version = 11 : i64} {
  func.func @_gru_lid_kernel(%arg0: i32, %arg1: memref<1x64x1xi32, #tpu.memory_space<vmem>>, %arg2: memref<47x384xbf16, #tpu.memory_space<vmem>>, %arg3: memref<128x384xbf16, #tpu.memory_space<vmem>>, %arg4: memref<1x384xf32, #tpu.memory_space<vmem>>, %arg5: memref<1x128xf32, #tpu.memory_space<vmem>>, %arg6: memref<128x5xbf16, #tpu.memory_space<vmem>>, %arg7: memref<1x5xf32, #tpu.memory_space<vmem>>, %arg8: memref<8x5xf32, #tpu.memory_space<vmem>>, %arg9: memref<64x384xf32, #tpu.memory_space<vmem>>) attributes {dimension_semantics = [#tpu.dimension_semantics<parallel>], iteration_bounds = array<i64: 1>, scalar_prefetch = 0 : i64, scratch_operands = 1 : i64, tpu.core_type = #tpu.core_type<tc>, window_params = [{transform_indices = @transform_0, window_bounds = array<i64: 1, 64, 1>}, {pipeline_mode = #tpu.pipeline_mode<synchronous>, transform_indices = @transform_1, window_bounds = array<i64: 47, 384>}, {pipeline_mode = #tpu.pipeline_mode<synchronous>, transform_indices = @transform_2, window_bounds = array<i64: 128, 384>}, {pipeline_mode = #tpu.pipeline_mode<synchronous>, transform_indices = @transform_3, window_bounds = array<i64: 1, 384>}, {pipeline_mode = #tpu.pipeline_mode<synchronous>, transform_indices = @transform_4, window_bounds = array<i64: 1, 128>}, {pipeline_mode = #tpu.pipeline_mode<synchronous>, transform_indices = @transform_5, window_bounds = array<i64: 128, 5>}, {pipeline_mode = #tpu.pipeline_mode<synchronous>, transform_indices = @transform_6, window_bounds = array<i64: 1, 5>}, {transform_indices = @transform_7, window_bounds = array<i64: 8, 5>}]} {
    %c0 = arith.constant 0 : index
    %c0_0 = arith.constant 0 : index
    %c0_1 = arith.constant 0 : index
    %0 = vector.load %arg1[%c0, %c0_0, %c0_1] : memref<1x64x1xi32, #tpu.memory_space<vmem>>, vector<1x64x1xi32>
    %1 = vector.shape_cast %0 : vector<1x64x1xi32> to vector<64x1xi32>
    %2 = tpu.iota {dimensions = array<i32: 1>} : vector<64x47xi32>
    %3 = vector.broadcast %1 : vector<64x1xi32> to vector<64x47xi32>
    %4 = arith.cmpi eq, %2, %3 : vector<64x47xi32>
    %5 = arith.extui %4 : vector<64x47xi1> to vector<64x47xi32>
    %6 = arith.sitofp %5 : vector<64x47xi32> to vector<64x47xf32>
    %7 = arith.truncf %6 : vector<64x47xf32> to vector<64x47xbf16>
    %c0_2 = arith.constant 0 : index
    %c0_3 = arith.constant 0 : index
    %8 = vector.load %arg2[%c0_2, %c0_3] : memref<47x384xbf16, #tpu.memory_space<vmem>>, vector<47x384xbf16>
    %cst = arith.constant dense<0.000000e+00> : vector<64x384xf32>
    %9 = tpu.matmul %7, %8, %cst {dimension_numbers = #tpu.dot_dimension_numbers<[1], [0], [0], [1], [0, 0, 1, 1], [], []>} : vector<64x47xbf16>, vector<47x384xbf16>, vector<64x384xf32> -> vector<64x384xf32>
    %c0_4 = arith.constant 0 : index
    %c0_5 = arith.constant 0 : index
    %10 = vector.load %arg4[%c0_4, %c0_5] : memref<1x384xf32, #tpu.memory_space<vmem>>, vector<1x384xf32>
    %11 = vector.broadcast %10 : vector<1x384xf32> to vector<64x384xf32>
    %12 = arith.addf %9, %11 : vector<64x384xf32>
    %c0_6 = arith.constant 0 : index
    %c0_7 = arith.constant 0 : index
    %13 = vector.load %arg9[%c0_6, %c0_7] : memref<64x384xf32, #tpu.memory_space<vmem>>, vector<64x384xf32>
    tpu.vector_store %arg9[%c0_6, %c0_7], %12 {strides = array<i32>} : memref<64x384xf32, #tpu.memory_space<vmem>>, vector<64x384xf32>,
    %c0_8 = arith.constant 0 : index
    %c0_9 = arith.constant 0 : index
    %14 = vector.load %arg5[%c0_8, %c0_9] : memref<1x128xf32, #tpu.memory_space<vmem>>, vector<1x128xf32>
    %cst_10 = arith.constant 0.000000e+00 : f32
    %15 = vector.broadcast %cst_10 : f32 to vector<8x128xf32>
    %c0_i32 = arith.constant 0 : i32
    %c8_i32 = arith.constant 8 : i32
    %16 = arith.muli %c0_i32, %c8_i32 : i32
    %17 = tpu.assume_multiple %16, 8 : i32
    %18 = arith.index_cast %17 : i32 to index
    %c0_11 = arith.constant 0 : index
    %19 = vector.load %arg9[%18, %c0_11] : memref<64x384xf32, #tpu.memory_space<vmem>>, vector<8x384xf32>
    %20 = arith.truncf %15 : vector<8x128xf32> to vector<8x128xbf16>
    %c0_12 = arith.constant 0 : index
    %c0_13 = arith.constant 0 : index
    %21 = vector.load %arg3[%c0_12, %c0_13] : memref<128x384xbf16, #tpu.memory_space<vmem>>, vector<128x128xbf16>
    %cst_14 = arith.constant dense<0.000000e+00> : vector<8x128xf32>
    %22 = tpu.matmul %20, %21, %cst_14 {dimension_numbers = #tpu.dot_dimension_numbers<[1], [0], [0], [1], [0, 0, 1, 1], [], []>} : vector<8x128xbf16>, vector<128x128xbf16>, vector<8x128xf32> -> vector<8x128xf32>
    %c0_15 = arith.constant 0 : index
    %c128 = arith.constant 128 : index
    %23 = vector.load %arg3[%c0_15, %c128] : memref<128x384xbf16, #tpu.memory_space<vmem>>, vector<128x128xbf16>
    %cst_16 = arith.constant dense<0.000000e+00> : vector<8x128xf32>
    %24 = tpu.matmul %20, %23, %cst_16 {dimension_numbers = #tpu.dot_dimension_numbers<[1], [0], [0], [1], [0, 0, 1, 1], [], []>} : vector<8x128xbf16>, vector<128x128xbf16>, vector<8x128xf32> -> vector<8x128xf32>
    %c0_17 = arith.constant 0 : index
    %c256 = arith.constant 256 : index
    %25 = vector.load %arg3[%c0_17, %c256] : memref<128x384xbf16, #tpu.memory_space<vmem>>, vector<128x128xbf16>
    %cst_18 = arith.constant dense<0.000000e+00> : vector<8x128xf32>
    %26 = tpu.matmul %20, %25, %cst_18 {dimension_numbers = #tpu.dot_dimension_numbers<[1], [0], [0], [1], [0, 0, 1, 1], [], []>} : vector<8x128xbf16>, vector<128x128xbf16>, vector<8x128xf32> -> vector<8x128xf32>
    %27 = vector.extract_strided_slice %19 {offsets = [0, 0], sizes = [8, 128], strides = [1, 1]} : vector<8x384xf32> to vector<8x128xf32>
    %28 = arith.addf %27, %22 : vector<8x128xf32>
    %29 = arith.negf %28 : vector<8x128xf32>
    %30 = math.exp %29 : vector<8x128xf32>
    %cst_19 = arith.constant 1.000000e+00 : f32
    %31 = vector.broadcast %cst_19 : f32 to vector<8x128xf32>
    %32 = arith.addf %31, %30 : vector<8x128xf32>
    %33 = arith.divf %31, %32 : vector<8x128xf32>
    %34 = vector.extract_strided_slice %19 {offsets = [0, 128], sizes = [8, 128], strides = [1, 1]} : vector<8x384xf32> to vector<8x128xf32>
    %35 = arith.addf %34, %24 : vector<8x128xf32>
    %36 = arith.negf %35 : vector<8x128xf32>
    %37 = math.exp %36 : vector<8x128xf32>
    %cst_20 = arith.constant 1.000000e+00 : f32
    %38 = vector.broadcast %cst_20 : f32 to vector<8x128xf32>
    %39 = arith.addf %38, %37 : vector<8x128xf32>
    %40 = arith.divf %38, %39 : vector<8x128xf32>
    %41 = vector.extract_strided_slice %19 {offsets = [0, 256], sizes = [8, 128], strides = [1, 1]} : vector<8x384xf32> to vector<8x128xf32>
    %42 = vector.broadcast %14 : vector<1x128xf32> to vector<8x128xf32>
    %43 = arith.addf %26, %42 : vector<8x128xf32>
    %44 = arith.mulf %33, %43 : vector<8x128xf32>
    %45 = arith.addf %41, %44 : vector<8x128xf32>
    %46 = math.tanh %45 : vector<8x128xf32>
    %cst_21 = arith.constant 1.000000e+00 : f32
    %47 = vector.broadcast %cst_21 : f32 to vector<8x128xf32>
    %48 = arith.subf %47, %40 : vector<8x128xf32>
    %49 = arith.mulf %48, %46 : vector<8x128xf32>
    %50 = arith.mulf %40, %15 : vector<8x128xf32>
    %51 = arith.addf %49, %50 : vector<8x128xf32>
    %c1_i32 = arith.constant 1 : i32
    %c8_i32_22 = arith.constant 8 : i32
    %52 = arith.muli %c1_i32, %c8_i32_22 : i32
    %53 = tpu.assume_multiple %52, 8 : i32
    %54 = arith.index_cast %53 : i32 to index
    %c0_23 = arith.constant 0 : index
    %55 = vector.load %arg9[%54, %c0_23] : memref<64x384xf32, #tpu.memory_space<vmem>>, vector<8x384xf32>
    %56 = arith.truncf %51 : vector<8x128xf32> to vector<8x128xbf16>
    %c0_24 = arith.constant 0 : index
    %c0_25 = arith.constant 0 : index
    %57 = vector.load %arg3[%c0_24, %c0_25] : memref<128x384xbf16, #tpu.memory_space<vmem>>, vector<128x128xbf16>
    %cst_26 = arith.constant dense<0.000000e+00> : vector<8x128xf32>
    %58 = tpu.matmul %56, %57, %cst_26 {dimension_numbers = #tpu.dot_dimension_numbers<[1], [0], [0], [1], [0, 0, 1, 1], [], []>} : vector<8x128xbf16>, vector<128x128xbf16>, vector<8x128xf32> -> vector<8x128xf32>
    %c0_27 = arith.constant 0 : index
    %c128_28 = arith.constant 128 : index
    %59 = vector.load %arg3[%c0_27, %c128_28] : memref<128x384xbf16, #tpu.memory_space<vmem>>, vector<128x128xbf16>
    %cst_29 = arith.constant dense<0.000000e+00> : vector<8x128xf32>
    %60 = tpu.matmul %56, %59, %cst_29 {dimension_numbers = #tpu.dot_dimension_numbers<[1], [0], [0], [1], [0, 0, 1, 1], [], []>} : vector<8x128xbf16>, vector<128x128xbf16>, vector<8x128xf32> -> vector<8x128xf32>
    %c0_30 = arith.constant 0 : index
    %c256_31 = arith.constant 256 : index
    %61 = vector.load %arg3[%c0_30, %c256_31] : memref<128x384xbf16, #tpu.memory_space<vmem>>, vector<128x128xbf16>
    %cst_32 = arith.constant dense<0.000000e+00> : vector<8x128xf32>
    %62 = tpu.matmul %56, %61, %cst_32 {dimension_numbers = #tpu.dot_dimension_numbers<[1], [0], [0], [1], [0, 0, 1, 1], [], []>} : vector<8x128xbf16>, vector<128x128xbf16>, vector<8x128xf32> -> vector<8x128xf32>
    %63 = vector.extract_strided_slice %55 {offsets = [0, 0], sizes = [8, 128], strides = [1, 1]} : vector<8x384xf32> to vector<8x128xf32>
    %64 = arith.addf %63, %58 : vector<8x128xf32>
    %65 = arith.negf %64 : vector<8x128xf32>
    %66 = math.exp %65 : vector<8x128xf32>
    %cst_33 = arith.constant 1.000000e+00 : f32
    %67 = vector.broadcast %cst_33 : f32 to vector<8x128xf32>
    %68 = arith.addf %67, %66 : vector<8x128xf32>
    %69 = arith.divf %67, %68 : vector<8x128xf32>
    %70 = vector.extract_strided_slice %55 {offsets = [0, 128], sizes = [8, 128], strides = [1, 1]} : vector<8x384xf32> to vector<8x128xf32>
    %71 = arith.addf %70, %60 : vector<8x128xf32>
    %72 = arith.negf %71 : vector<8x128xf32>
    %73 = math.exp %72 : vector<8x128xf32>
    %cst_34 = arith.constant 1.000000e+00 : f32
    %74 = vector.broadcast %cst_34 : f32 to vector<8x128xf32>
    %75 = arith.addf %74, %73 : vector<8x128xf32>
    %76 = arith.divf %74, %75 : vector<8x128xf32>
    %77 = vector.extract_strided_slice %55 {offsets = [0, 256], sizes = [8, 128], strides = [1, 1]} : vector<8x384xf32> to vector<8x128xf32>
    %78 = vector.broadcast %14 : vector<1x128xf32> to vector<8x128xf32>
    %79 = arith.addf %62, %78 : vector<8x128xf32>
    %80 = arith.mulf %69, %79 : vector<8x128xf32>
    %81 = arith.addf %77, %80 : vector<8x128xf32>
    %82 = math.tanh %81 : vector<8x128xf32>
    %cst_35 = arith.constant 1.000000e+00 : f32
    %83 = vector.broadcast %cst_35 : f32 to vector<8x128xf32>
    %84 = arith.subf %83, %76 : vector<8x128xf32>
    %85 = arith.mulf %84, %82 : vector<8x128xf32>
    %86 = arith.mulf %76, %51 : vector<8x128xf32>
    %87 = arith.addf %85, %86 : vector<8x128xf32>
    %c2_i32 = arith.constant 2 : i32
    %c8_i32_36 = arith.constant 8 : i32
    %88 = arith.muli %c2_i32, %c8_i32_36 : i32
    %89 = tpu.assume_multiple %88, 8 : i32
    %90 = arith.index_cast %89 : i32 to index
    %c0_37 = arith.constant 0 : index
    %91 = vector.load %arg9[%90, %c0_37] : memref<64x384xf32, #tpu.memory_space<vmem>>, vector<8x384xf32>
    %92 = arith.truncf %87 : vector<8x128xf32> to vector<8x128xbf16>
    %c0_38 = arith.constant 0 : index
    %c0_39 = arith.constant 0 : index
    %93 = vector.load %arg3[%c0_38, %c0_39] : memref<128x384xbf16, #tpu.memory_space<vmem>>, vector<128x128xbf16>
    %cst_40 = arith.constant dense<0.000000e+00> : vector<8x128xf32>
    %94 = tpu.matmul %92, %93, %cst_40 {dimension_numbers = #tpu.dot_dimension_numbers<[1], [0], [0], [1], [0, 0, 1, 1], [], []>} : vector<8x128xbf16>, vector<128x128xbf16>, vector<8x128xf32> -> vector<8x128xf32>
    %c0_41 = arith.constant 0 : index
    %c128_42 = arith.constant 128 : index
    %95 = vector.load %arg3[%c0_41, %c128_42] : memref<128x384xbf16, #tpu.memory_space<vmem>>, vector<128x128xbf16>
    %cst_43 = arith.constant dense<0.000000e+00> : vector<8x128xf32>
    %96 = tpu.matmul %92, %95, %cst_43 {dimension_numbers = #tpu.dot_dimension_numbers<[1], [0], [0], [1], [0, 0, 1, 1], [], []>} : vector<8x128xbf16>, vector<128x128xbf16>, vector<8x128xf32> -> vector<8x128xf32>
    %c0_44 = arith.constant 0 : index
    %c256_45 = arith.constant 256 : index
    %97 = vector.load %arg3[%c0_44, %c256_45] : memref<128x384xbf16, #tpu.memory_space<vmem>>, vector<128x128xbf16>
    %cst_46 = arith.constant dense<0.000000e+00> : vector<8x128xf32>
    %98 = tpu.matmul %92, %97, %cst_46 {dimension_numbers = #tpu.dot_dimension_numbers<[1], [0], [0], [1], [0, 0, 1, 1], [], []>} : vector<8x128xbf16>, vector<128x128xbf16>, vector<8x128xf32> -> vector<8x128xf32>
    %99 = vector.extract_strided_slice %91 {offsets = [0, 0], sizes = [8, 128], strides = [1, 1]} : vector<8x384xf32> to vector<8x128xf32>
    %100 = arith.addf %99, %94 : vector<8x128xf32>
    %101 = arith.negf %100 : vector<8x128xf32>
    %102 = math.exp %101 : vector<8x128xf32>
    %cst_47 = arith.constant 1.000000e+00 : f32
    %103 = vector.broadcast %cst_47 : f32 to vector<8x128xf32>
    %104 = arith.addf %103, %102 : vector<8x128xf32>
    %105 = arith.divf %103, %104 : vector<8x128xf32>
    %106 = vector.extract_strided_slice %91 {offsets = [0, 128], sizes = [8, 128], strides = [1, 1]} : vector<8x384xf32> to vector<8x128xf32>
    %107 = arith.addf %106, %96 : vector<8x128xf32>
    %108 = arith.negf %107 : vector<8x128xf32>
    %109 = math.exp %108 : vector<8x128xf32>
    %cst_48 = arith.constant 1.000000e+00 : f32
    %110 = vector.broadcast %cst_48 : f32 to vector<8x128xf32>
    %111 = arith.addf %110, %109 : vector<8x128xf32>
    %112 = arith.divf %110, %111 : vector<8x128xf32>
    %113 = vector.extract_strided_slice %91 {offsets = [0, 256], sizes = [8, 128], strides = [1, 1]} : vector<8x384xf32> to vector<8x128xf32>
    %114 = vector.broadcast %14 : vector<1x128xf32> to vector<8x128xf32>
    %115 = arith.addf %98, %114 : vector<8x128xf32>
    %116 = arith.mulf %105, %115 : vector<8x128xf32>
    %117 = arith.addf %113, %116 : vector<8x128xf32>
    %118 = math.tanh %117 : vector<8x128xf32>
    %cst_49 = arith.constant 1.000000e+00 : f32
    %119 = vector.broadcast %cst_49 : f32 to vector<8x128xf32>
    %120 = arith.subf %119, %112 : vector<8x128xf32>
    %121 = arith.mulf %120, %118 : vector<8x128xf32>
    %122 = arith.mulf %112, %87 : vector<8x128xf32>
    %123 = arith.addf %121, %122 : vector<8x128xf32>
    %c3_i32 = arith.constant 3 : i32
    %c8_i32_50 = arith.constant 8 : i32
    %124 = arith.muli %c3_i32, %c8_i32_50 : i32
    %125 = tpu.assume_multiple %124, 8 : i32
    %126 = arith.index_cast %125 : i32 to index
    %c0_51 = arith.constant 0 : index
    %127 = vector.load %arg9[%126, %c0_51] : memref<64x384xf32, #tpu.memory_space<vmem>>, vector<8x384xf32>
    %128 = arith.truncf %123 : vector<8x128xf32> to vector<8x128xbf16>
    %c0_52 = arith.constant 0 : index
    %c0_53 = arith.constant 0 : index
    %129 = vector.load %arg3[%c0_52, %c0_53] : memref<128x384xbf16, #tpu.memory_space<vmem>>, vector<128x128xbf16>
    %cst_54 = arith.constant dense<0.000000e+00> : vector<8x128xf32>
    %130 = tpu.matmul %128, %129, %cst_54 {dimension_numbers = #tpu.dot_dimension_numbers<[1], [0], [0], [1], [0, 0, 1, 1], [], []>} : vector<8x128xbf16>, vector<128x128xbf16>, vector<8x128xf32> -> vector<8x128xf32>
    %c0_55 = arith.constant 0 : index
    %c128_56 = arith.constant 128 : index
    %131 = vector.load %arg3[%c0_55, %c128_56] : memref<128x384xbf16, #tpu.memory_space<vmem>>, vector<128x128xbf16>
    %cst_57 = arith.constant dense<0.000000e+00> : vector<8x128xf32>
    %132 = tpu.matmul %128, %131, %cst_57 {dimension_numbers = #tpu.dot_dimension_numbers<[1], [0], [0], [1], [0, 0, 1, 1], [], []>} : vector<8x128xbf16>, vector<128x128xbf16>, vector<8x128xf32> -> vector<8x128xf32>
    %c0_58 = arith.constant 0 : index
    %c256_59 = arith.constant 256 : index
    %133 = vector.load %arg3[%c0_58, %c256_59] : memref<128x384xbf16, #tpu.memory_space<vmem>>, vector<128x128xbf16>
    %cst_60 = arith.constant dense<0.000000e+00> : vector<8x128xf32>
    %134 = tpu.matmul %128, %133, %cst_60 {dimension_numbers = #tpu.dot_dimension_numbers<[1], [0], [0], [1], [0, 0, 1, 1], [], []>} : vector<8x128xbf16>, vector<128x128xbf16>, vector<8x128xf32> -> vector<8x128xf32>
    %135 = vector.extract_strided_slice %127 {offsets = [0, 0], sizes = [8, 128], strides = [1, 1]} : vector<8x384xf32> to vector<8x128xf32>
    %136 = arith.addf %135, %130 : vector<8x128xf32>
    %137 = arith.negf %136 : vector<8x128xf32>
    %138 = math.exp %137 : vector<8x128xf32>
    %cst_61 = arith.constant 1.000000e+00 : f32
    %139 = vector.broadcast %cst_61 : f32 to vector<8x128xf32>
    %140 = arith.addf %139, %138 : vector<8x128xf32>
    %141 = arith.divf %139, %140 : vector<8x128xf32>
    %142 = vector.extract_strided_slice %127 {offsets = [0, 128], sizes = [8, 128], strides = [1, 1]} : vector<8x384xf32> to vector<8x128xf32>
    %143 = arith.addf %142, %132 : vector<8x128xf32>
    %144 = arith.negf %143 : vector<8x128xf32>
    %145 = math.exp %144 : vector<8x128xf32>
    %cst_62 = arith.constant 1.000000e+00 : f32
    %146 = vector.broadcast %cst_62 : f32 to vector<8x128xf32>
    %147 = arith.addf %146, %145 : vector<8x128xf32>
    %148 = arith.divf %146, %147 : vector<8x128xf32>
    %149 = vector.extract_strided_slice %127 {offsets = [0, 256], sizes = [8, 128], strides = [1, 1]} : vector<8x384xf32> to vector<8x128xf32>
    %150 = vector.broadcast %14 : vector<1x128xf32> to vector<8x128xf32>
    %151 = arith.addf %134, %150 : vector<8x128xf32>
    %152 = arith.mulf %141, %151 : vector<8x128xf32>
    %153 = arith.addf %149, %152 : vector<8x128xf32>
    %154 = math.tanh %153 : vector<8x128xf32>
    %cst_63 = arith.constant 1.000000e+00 : f32
    %155 = vector.broadcast %cst_63 : f32 to vector<8x128xf32>
    %156 = arith.subf %155, %148 : vector<8x128xf32>
    %157 = arith.mulf %156, %154 : vector<8x128xf32>
    %158 = arith.mulf %148, %123 : vector<8x128xf32>
    %159 = arith.addf %157, %158 : vector<8x128xf32>
    %c4_i32 = arith.constant 4 : i32
    %c8_i32_64 = arith.constant 8 : i32
    %160 = arith.muli %c4_i32, %c8_i32_64 : i32
    %161 = tpu.assume_multiple %160, 8 : i32
    %162 = arith.index_cast %161 : i32 to index
    %c0_65 = arith.constant 0 : index
    %163 = vector.load %arg9[%162, %c0_65] : memref<64x384xf32, #tpu.memory_space<vmem>>, vector<8x384xf32>
    %164 = arith.truncf %159 : vector<8x128xf32> to vector<8x128xbf16>
    %c0_66 = arith.constant 0 : index
    %c0_67 = arith.constant 0 : index
    %165 = vector.load %arg3[%c0_66, %c0_67] : memref<128x384xbf16, #tpu.memory_space<vmem>>, vector<128x128xbf16>
    %cst_68 = arith.constant dense<0.000000e+00> : vector<8x128xf32>
    %166 = tpu.matmul %164, %165, %cst_68 {dimension_numbers = #tpu.dot_dimension_numbers<[1], [0], [0], [1], [0, 0, 1, 1], [], []>} : vector<8x128xbf16>, vector<128x128xbf16>, vector<8x128xf32> -> vector<8x128xf32>
    %c0_69 = arith.constant 0 : index
    %c128_70 = arith.constant 128 : index
    %167 = vector.load %arg3[%c0_69, %c128_70] : memref<128x384xbf16, #tpu.memory_space<vmem>>, vector<128x128xbf16>
    %cst_71 = arith.constant dense<0.000000e+00> : vector<8x128xf32>
    %168 = tpu.matmul %164, %167, %cst_71 {dimension_numbers = #tpu.dot_dimension_numbers<[1], [0], [0], [1], [0, 0, 1, 1], [], []>} : vector<8x128xbf16>, vector<128x128xbf16>, vector<8x128xf32> -> vector<8x128xf32>
    %c0_72 = arith.constant 0 : index
    %c256_73 = arith.constant 256 : index
    %169 = vector.load %arg3[%c0_72, %c256_73] : memref<128x384xbf16, #tpu.memory_space<vmem>>, vector<128x128xbf16>
    %cst_74 = arith.constant dense<0.000000e+00> : vector<8x128xf32>
    %170 = tpu.matmul %164, %169, %cst_74 {dimension_numbers = #tpu.dot_dimension_numbers<[1], [0], [0], [1], [0, 0, 1, 1], [], []>} : vector<8x128xbf16>, vector<128x128xbf16>, vector<8x128xf32> -> vector<8x128xf32>
    %171 = vector.extract_strided_slice %163 {offsets = [0, 0], sizes = [8, 128], strides = [1, 1]} : vector<8x384xf32> to vector<8x128xf32>
    %172 = arith.addf %171, %166 : vector<8x128xf32>
    %173 = arith.negf %172 : vector<8x128xf32>
    %174 = math.exp %173 : vector<8x128xf32>
    %cst_75 = arith.constant 1.000000e+00 : f32
    %175 = vector.broadcast %cst_75 : f32 to vector<8x128xf32>
    %176 = arith.addf %175, %174 : vector<8x128xf32>
    %177 = arith.divf %175, %176 : vector<8x128xf32>
    %178 = vector.extract_strided_slice %163 {offsets = [0, 128], sizes = [8, 128], strides = [1, 1]} : vector<8x384xf32> to vector<8x128xf32>
    %179 = arith.addf %178, %168 : vector<8x128xf32>
    %180 = arith.negf %179 : vector<8x128xf32>
    %181 = math.exp %180 : vector<8x128xf32>
    %cst_76 = arith.constant 1.000000e+00 : f32
    %182 = vector.broadcast %cst_76 : f32 to vector<8x128xf32>
    %183 = arith.addf %182, %181 : vector<8x128xf32>
    %184 = arith.divf %182, %183 : vector<8x128xf32>
    %185 = vector.extract_strided_slice %163 {offsets = [0, 256], sizes = [8, 128], strides = [1, 1]} : vector<8x384xf32> to vector<8x128xf32>
    %186 = vector.broadcast %14 : vector<1x128xf32> to vector<8x128xf32>
    %187 = arith.addf %170, %186 : vector<8x128xf32>
    %188 = arith.mulf %177, %187 : vector<8x128xf32>
    %189 = arith.addf %185, %188 : vector<8x128xf32>
    %190 = math.tanh %189 : vector<8x128xf32>
    %cst_77 = arith.constant 1.000000e+00 : f32
    %191 = vector.broadcast %cst_77 : f32 to vector<8x128xf32>
    %192 = arith.subf %191, %184 : vector<8x128xf32>
    %193 = arith.mulf %192, %190 : vector<8x128xf32>
    %194 = arith.mulf %184, %159 : vector<8x128xf32>
    %195 = arith.addf %193, %194 : vector<8x128xf32>
    %c5_i32 = arith.constant 5 : i32
    %c8_i32_78 = arith.constant 8 : i32
    %196 = arith.muli %c5_i32, %c8_i32_78 : i32
    %197 = tpu.assume_multiple %196, 8 : i32
    %198 = arith.index_cast %197 : i32 to index
    %c0_79 = arith.constant 0 : index
    %199 = vector.load %arg9[%198, %c0_79] : memref<64x384xf32, #tpu.memory_space<vmem>>, vector<8x384xf32>
    %200 = arith.truncf %195 : vector<8x128xf32> to vector<8x128xbf16>
    %c0_80 = arith.constant 0 : index
    %c0_81 = arith.constant 0 : index
    %201 = vector.load %arg3[%c0_80, %c0_81] : memref<128x384xbf16, #tpu.memory_space<vmem>>, vector<128x128xbf16>
    %cst_82 = arith.constant dense<0.000000e+00> : vector<8x128xf32>
    %202 = tpu.matmul %200, %201, %cst_82 {dimension_numbers = #tpu.dot_dimension_numbers<[1], [0], [0], [1], [0, 0, 1, 1], [], []>} : vector<8x128xbf16>, vector<128x128xbf16>, vector<8x128xf32> -> vector<8x128xf32>
    %c0_83 = arith.constant 0 : index
    %c128_84 = arith.constant 128 : index
    %203 = vector.load %arg3[%c0_83, %c128_84] : memref<128x384xbf16, #tpu.memory_space<vmem>>, vector<128x128xbf16>
    %cst_85 = arith.constant dense<0.000000e+00> : vector<8x128xf32>
    %204 = tpu.matmul %200, %203, %cst_85 {dimension_numbers = #tpu.dot_dimension_numbers<[1], [0], [0], [1], [0, 0, 1, 1], [], []>} : vector<8x128xbf16>, vector<128x128xbf16>, vector<8x128xf32> -> vector<8x128xf32>
    %c0_86 = arith.constant 0 : index
    %c256_87 = arith.constant 256 : index
    %205 = vector.load %arg3[%c0_86, %c256_87] : memref<128x384xbf16, #tpu.memory_space<vmem>>, vector<128x128xbf16>
    %cst_88 = arith.constant dense<0.000000e+00> : vector<8x128xf32>
    %206 = tpu.matmul %200, %205, %cst_88 {dimension_numbers = #tpu.dot_dimension_numbers<[1], [0], [0], [1], [0, 0, 1, 1], [], []>} : vector<8x128xbf16>, vector<128x128xbf16>, vector<8x128xf32> -> vector<8x128xf32>
    %207 = vector.extract_strided_slice %199 {offsets = [0, 0], sizes = [8, 128], strides = [1, 1]} : vector<8x384xf32> to vector<8x128xf32>
    %208 = arith.addf %207, %202 : vector<8x128xf32>
    %209 = arith.negf %208 : vector<8x128xf32>
    %210 = math.exp %209 : vector<8x128xf32>
    %cst_89 = arith.constant 1.000000e+00 : f32
    %211 = vector.broadcast %cst_89 : f32 to vector<8x128xf32>
    %212 = arith.addf %211, %210 : vector<8x128xf32>
    %213 = arith.divf %211, %212 : vector<8x128xf32>
    %214 = vector.extract_strided_slice %199 {offsets = [0, 128], sizes = [8, 128], strides = [1, 1]} : vector<8x384xf32> to vector<8x128xf32>
    %215 = arith.addf %214, %204 : vector<8x128xf32>
    %216 = arith.negf %215 : vector<8x128xf32>
    %217 = math.exp %216 : vector<8x128xf32>
    %cst_90 = arith.constant 1.000000e+00 : f32
    %218 = vector.broadcast %cst_90 : f32 to vector<8x128xf32>
    %219 = arith.addf %218, %217 : vector<8x128xf32>
    %220 = arith.divf %218, %219 : vector<8x128xf32>
    %221 = vector.extract_strided_slice %199 {offsets = [0, 256], sizes = [8, 128], strides = [1, 1]} : vector<8x384xf32> to vector<8x128xf32>
    %222 = vector.broadcast %14 : vector<1x128xf32> to vector<8x128xf32>
    %223 = arith.addf %206, %222 : vector<8x128xf32>
    %224 = arith.mulf %213, %223 : vector<8x128xf32>
    %225 = arith.addf %221, %224 : vector<8x128xf32>
    %226 = math.tanh %225 : vector<8x128xf32>
    %cst_91 = arith.constant 1.000000e+00 : f32
    %227 = vector.broadcast %cst_91 : f32 to vector<8x128xf32>
    %228 = arith.subf %227, %220 : vector<8x128xf32>
    %229 = arith.mulf %228, %226 : vector<8x128xf32>
    %230 = arith.mulf %220, %195 : vector<8x128xf32>
    %231 = arith.addf %229, %230 : vector<8x128xf32>
    %c6_i32 = arith.constant 6 : i32
    %c8_i32_92 = arith.constant 8 : i32
    %232 = arith.muli %c6_i32, %c8_i32_92 : i32
    %233 = tpu.assume_multiple %232, 8 : i32
    %234 = arith.index_cast %233 : i32 to index
    %c0_93 = arith.constant 0 : index
    %235 = vector.load %arg9[%234, %c0_93] : memref<64x384xf32, #tpu.memory_space<vmem>>, vector<8x384xf32>
    %236 = arith.truncf %231 : vector<8x128xf32> to vector<8x128xbf16>
    %c0_94 = arith.constant 0 : index
    %c0_95 = arith.constant 0 : index
    %237 = vector.load %arg3[%c0_94, %c0_95] : memref<128x384xbf16, #tpu.memory_space<vmem>>, vector<128x128xbf16>
    %cst_96 = arith.constant dense<0.000000e+00> : vector<8x128xf32>
    %238 = tpu.matmul %236, %237, %cst_96 {dimension_numbers = #tpu.dot_dimension_numbers<[1], [0], [0], [1], [0, 0, 1, 1], [], []>} : vector<8x128xbf16>, vector<128x128xbf16>, vector<8x128xf32> -> vector<8x128xf32>
    %c0_97 = arith.constant 0 : index
    %c128_98 = arith.constant 128 : index
    %239 = vector.load %arg3[%c0_97, %c128_98] : memref<128x384xbf16, #tpu.memory_space<vmem>>, vector<128x128xbf16>
    %cst_99 = arith.constant dense<0.000000e+00> : vector<8x128xf32>
    %240 = tpu.matmul %236, %239, %cst_99 {dimension_numbers = #tpu.dot_dimension_numbers<[1], [0], [0], [1], [0, 0, 1, 1], [], []>} : vector<8x128xbf16>, vector<128x128xbf16>, vector<8x128xf32> -> vector<8x128xf32>
    %c0_100 = arith.constant 0 : index
    %c256_101 = arith.constant 256 : index
    %241 = vector.load %arg3[%c0_100, %c256_101] : memref<128x384xbf16, #tpu.memory_space<vmem>>, vector<128x128xbf16>
    %cst_102 = arith.constant dense<0.000000e+00> : vector<8x128xf32>
    %242 = tpu.matmul %236, %241, %cst_102 {dimension_numbers = #tpu.dot_dimension_numbers<[1], [0], [0], [1], [0, 0, 1, 1], [], []>} : vector<8x128xbf16>, vector<128x128xbf16>, vector<8x128xf32> -> vector<8x128xf32>
    %243 = vector.extract_strided_slice %235 {offsets = [0, 0], sizes = [8, 128], strides = [1, 1]} : vector<8x384xf32> to vector<8x128xf32>
    %244 = arith.addf %243, %238 : vector<8x128xf32>
    %245 = arith.negf %244 : vector<8x128xf32>
    %246 = math.exp %245 : vector<8x128xf32>
    %cst_103 = arith.constant 1.000000e+00 : f32
    %247 = vector.broadcast %cst_103 : f32 to vector<8x128xf32>
    %248 = arith.addf %247, %246 : vector<8x128xf32>
    %249 = arith.divf %247, %248 : vector<8x128xf32>
    %250 = vector.extract_strided_slice %235 {offsets = [0, 128], sizes = [8, 128], strides = [1, 1]} : vector<8x384xf32> to vector<8x128xf32>
    %251 = arith.addf %250, %240 : vector<8x128xf32>
    %252 = arith.negf %251 : vector<8x128xf32>
    %253 = math.exp %252 : vector<8x128xf32>
    %cst_104 = arith.constant 1.000000e+00 : f32
    %254 = vector.broadcast %cst_104 : f32 to vector<8x128xf32>
    %255 = arith.addf %254, %253 : vector<8x128xf32>
    %256 = arith.divf %254, %255 : vector<8x128xf32>
    %257 = vector.extract_strided_slice %235 {offsets = [0, 256], sizes = [8, 128], strides = [1, 1]} : vector<8x384xf32> to vector<8x128xf32>
    %258 = vector.broadcast %14 : vector<1x128xf32> to vector<8x128xf32>
    %259 = arith.addf %242, %258 : vector<8x128xf32>
    %260 = arith.mulf %249, %259 : vector<8x128xf32>
    %261 = arith.addf %257, %260 : vector<8x128xf32>
    %262 = math.tanh %261 : vector<8x128xf32>
    %cst_105 = arith.constant 1.000000e+00 : f32
    %263 = vector.broadcast %cst_105 : f32 to vector<8x128xf32>
    %264 = arith.subf %263, %256 : vector<8x128xf32>
    %265 = arith.mulf %264, %262 : vector<8x128xf32>
    %266 = arith.mulf %256, %231 : vector<8x128xf32>
    %267 = arith.addf %265, %266 : vector<8x128xf32>
    %c7_i32 = arith.constant 7 : i32
    %c8_i32_106 = arith.constant 8 : i32
    %268 = arith.muli %c7_i32, %c8_i32_106 : i32
    %269 = tpu.assume_multiple %268, 8 : i32
    %270 = arith.index_cast %269 : i32 to index
    %c0_107 = arith.constant 0 : index
    %271 = vector.load %arg9[%270, %c0_107] : memref<64x384xf32, #tpu.memory_space<vmem>>, vector<8x384xf32>
    %272 = arith.truncf %267 : vector<8x128xf32> to vector<8x128xbf16>
    %c0_108 = arith.constant 0 : index
    %c0_109 = arith.constant 0 : index
    %273 = vector.load %arg3[%c0_108, %c0_109] : memref<128x384xbf16, #tpu.memory_space<vmem>>, vector<128x128xbf16>
    %cst_110 = arith.constant dense<0.000000e+00> : vector<8x128xf32>
    %274 = tpu.matmul %272, %273, %cst_110 {dimension_numbers = #tpu.dot_dimension_numbers<[1], [0], [0], [1], [0, 0, 1, 1], [], []>} : vector<8x128xbf16>, vector<128x128xbf16>, vector<8x128xf32> -> vector<8x128xf32>
    %c0_111 = arith.constant 0 : index
    %c128_112 = arith.constant 128 : index
    %275 = vector.load %arg3[%c0_111, %c128_112] : memref<128x384xbf16, #tpu.memory_space<vmem>>, vector<128x128xbf16>
    %cst_113 = arith.constant dense<0.000000e+00> : vector<8x128xf32>
    %276 = tpu.matmul %272, %275, %cst_113 {dimension_numbers = #tpu.dot_dimension_numbers<[1], [0], [0], [1], [0, 0, 1, 1], [], []>} : vector<8x128xbf16>, vector<128x128xbf16>, vector<8x128xf32> -> vector<8x128xf32>
    %c0_114 = arith.constant 0 : index
    %c256_115 = arith.constant 256 : index
    %277 = vector.load %arg3[%c0_114, %c256_115] : memref<128x384xbf16, #tpu.memory_space<vmem>>, vector<128x128xbf16>
    %cst_116 = arith.constant dense<0.000000e+00> : vector<8x128xf32>
    %278 = tpu.matmul %272, %277, %cst_116 {dimension_numbers = #tpu.dot_dimension_numbers<[1], [0], [0], [1], [0, 0, 1, 1], [], []>} : vector<8x128xbf16>, vector<128x128xbf16>, vector<8x128xf32> -> vector<8x128xf32>
    %279 = vector.extract_strided_slice %271 {offsets = [0, 0], sizes = [8, 128], strides = [1, 1]} : vector<8x384xf32> to vector<8x128xf32>
    %280 = arith.addf %279, %274 : vector<8x128xf32>
    %281 = arith.negf %280 : vector<8x128xf32>
    %282 = math.exp %281 : vector<8x128xf32>
    %cst_117 = arith.constant 1.000000e+00 : f32
    %283 = vector.broadcast %cst_117 : f32 to vector<8x128xf32>
    %284 = arith.addf %283, %282 : vector<8x128xf32>
    %285 = arith.divf %283, %284 : vector<8x128xf32>
    %286 = vector.extract_strided_slice %271 {offsets = [0, 128], sizes = [8, 128], strides = [1, 1]} : vector<8x384xf32> to vector<8x128xf32>
    %287 = arith.addf %286, %276 : vector<8x128xf32>
    %288 = arith.negf %287 : vector<8x128xf32>
    %289 = math.exp %288 : vector<8x128xf32>
    %cst_118 = arith.constant 1.000000e+00 : f32
    %290 = vector.broadcast %cst_118 : f32 to vector<8x128xf32>
    %291 = arith.addf %290, %289 : vector<8x128xf32>
    %292 = arith.divf %290, %291 : vector<8x128xf32>
    %293 = vector.extract_strided_slice %271 {offsets = [0, 256], sizes = [8, 128], strides = [1, 1]} : vector<8x384xf32> to vector<8x128xf32>
    %294 = vector.broadcast %14 : vector<1x128xf32> to vector<8x128xf32>
    %295 = arith.addf %278, %294 : vector<8x128xf32>
    %296 = arith.mulf %285, %295 : vector<8x128xf32>
    %297 = arith.addf %293, %296 : vector<8x128xf32>
    %298 = math.tanh %297 : vector<8x128xf32>
    %cst_119 = arith.constant 1.000000e+00 : f32
    %299 = vector.broadcast %cst_119 : f32 to vector<8x128xf32>
    %300 = arith.subf %299, %292 : vector<8x128xf32>
    %301 = arith.mulf %300, %298 : vector<8x128xf32>
    %302 = arith.mulf %292, %267 : vector<8x128xf32>
    %303 = arith.addf %301, %302 : vector<8x128xf32>
    %c8_i32_120 = arith.constant 8 : i32
    %304 = arith.truncf %303 : vector<8x128xf32> to vector<8x128xbf16>
    %c0_121 = arith.constant 0 : index
    %c0_122 = arith.constant 0 : index
    %305 = vector.load %arg6[%c0_121, %c0_122] : memref<128x5xbf16, #tpu.memory_space<vmem>>, vector<128x5xbf16>
    %cst_123 = arith.constant dense<0.000000e+00> : vector<8x5xf32>
    %306 = tpu.matmul %304, %305, %cst_123 {dimension_numbers = #tpu.dot_dimension_numbers<[1], [0], [0], [1], [0, 0, 1, 1], [], []>} : vector<8x128xbf16>, vector<128x5xbf16>, vector<8x5xf32> -> vector<8x5xf32>
    %c0_124 = arith.constant 0 : index
    %c0_125 = arith.constant 0 : index
    %307 = vector.load %arg7[%c0_124, %c0_125] : memref<1x5xf32, #tpu.memory_space<vmem>>, vector<1x5xf32>
    %308 = vector.broadcast %307 : vector<1x5xf32> to vector<8x5xf32>
    %309 = arith.addf %306, %308 : vector<8x5xf32>
    %c0_126 = arith.constant 0 : index
    %c0_127 = arith.constant 0 : index
    %310 = vector.load %arg8[%c0_126, %c0_127] : memref<8x5xf32, #tpu.memory_space<vmem>>, vector<8x5xf32>
    tpu.vector_store %arg8[%c0_126, %c0_127], %309 {strides = array<i32>} : memref<8x5xf32, #tpu.memory_space<vmem>>, vector<8x5xf32>,
    return
  }
  func.func @transform_0(%arg0: i32) -> (i32, i32, i32) {
    %c0_i32 = arith.constant 0 : i32
    %c0_i32_0 = arith.constant 0 : i32
    %c0_i32_1 = arith.constant 0 : i32
    return %arg0, %c0_i32, %c0_i32_0 : i32, i32, i32
  }
  func.func @transform_1(%arg0: i32) -> (i32, i32) {
    %c0_i32 = arith.constant 0 : i32
    %c0_i32_0 = arith.constant 0 : i32
    %c0_i32_1 = arith.constant 0 : i32
    return %c0_i32, %c0_i32_0 : i32, i32
  }
  func.func @transform_2(%arg0: i32) -> (i32, i32) {
    %c0_i32 = arith.constant 0 : i32
    %c0_i32_0 = arith.constant 0 : i32
    %c0_i32_1 = arith.constant 0 : i32
    return %c0_i32, %c0_i32_0 : i32, i32
  }
  func.func @transform_3(%arg0: i32) -> (i32, i32) {
    %c0_i32 = arith.constant 0 : i32
    %c0_i32_0 = arith.constant 0 : i32
    %c0_i32_1 = arith.constant 0 : i32
    return %c0_i32, %c0_i32_0 : i32, i32
  }
  func.func @transform_4(%arg0: i32) -> (i32, i32) {
    %c0_i32 = arith.constant 0 : i32
    %c0_i32_0 = arith.constant 0 : i32
    %c0_i32_1 = arith.constant 0 : i32
    return %c0_i32, %c0_i32_0 : i32, i32
  }
  func.func @transform_5(%arg0: i32) -> (i32, i32) {
    %c0_i32 = arith.constant 0 : i32
    %c0_i32_0 = arith.constant 0 : i32
    %c0_i32_1 = arith.constant 0 : i32
    return %c0_i32, %c0_i32_0 : i32, i32
  }
  func.func @transform_6(%arg0: i32) -> (i32, i32) {
    %c0_i32 = arith.constant 0 : i32
    %c0_i32_0 = arith.constant 0 : i32
    %c0_i32_1 = arith.constant 0 : i32
    return %c0_i32, %c0_i32_0 : i32, i32
  }
  func.func @transform_7(%arg0: i32) -> (i32, i32) {
    %c0_i32 = arith.constant 0 : i32
    %c0_i32_0 = arith.constant 0 : i32
    return %arg0, %c0_i32 : i32, i32
  }
}

</mosaic_0001>

<bundles_post_ra>
// kernel: tpu_custom_call.1
= control target key start
LH: loop header
LB: loop body
LE: loop exit
PB: predicated region body
PF: predicated region fallthrough
CT: control target
= control target key end

     0   :  { %12 = vsyncpa [#allocation4], 0  ;;  %s3737_s0 = inlined_call_operand.vmem [shape: s32[1,64,1], index: 0, kind: input, shape index: {}]   ;;  %s3738_s1 = inlined_call_operand.vmem [shape: bf16[47,384], index: 1, kind: input, shape index: {}]   ;;  %s3739_s2 = inlined_call_operand.hbm [shape: bf16[128,384], index: 2, kind: input, shape index: {}]   ;;  %s3740_s3 = inlined_call_operand.vmem [shape: f32[1,384], index: 3, kind: input, shape index: {}]   ;;  %s3741_s4 = inlined_call_operand.vmem [shape: f32[1,128], index: 4, kind: input, shape index: {}]   ;;  %s3742_s5 = inlined_call_operand.vmem [shape: bf16[128,5], index: 5, kind: input, shape index: {}]   ;;  %s3743_s6 = inlined_call_operand.vmem [shape: f32[1,5], index: 6, kind: input, shape index: {}]   ;;  %s3744_s7 = inlined_call_operand.hbm [shape: f32[8,5], index: 7, kind: output, shape index: {}]  }
   0x1   :  { %13 = vsyncpa [#allocation5], 0  ;;  %s2908_s24 = smov [#allocation3]  }
   0x2   :  { %s23_s25 = sshll.u32 %s2908_s24, 4  ;;  %s24_s25 = int_to_ptr.vmem [resolvable:$true] %s23_s25 }
   0x3   :  { %s2872_s26 = scalar_lea.vmem %s24_s25, 3072  ;;  %p2877_p1 = scmp.lt.s32.totalorder %s24_s25, %s24_s25 }
   0x4   :  { %p2873_p0 = scmp.ne.s32.totalorder %s24_s25, %s2872_s26  ;;  %p2878_p2 = scmp.lt.s32.totalorder %s2872_s26, %s2872_s26 }
   0x6   :  { %p2879_p3 = por %p2878_p2, %p2877_p1 }
   0x8   :  { %p2880_p4 = pnand %p2879_p3, %p2873_p0 }
   0xa   :  { %2883 = shalt.err (!%p2880_p4)
}
   0xb   :  { %s2909_s27 = smov 192   ;;  %s2910_s28 = smov 12  }
   0xc   :  { %29 = dma.hbm_to_vmem [thread:$0]  %s3739_s2, 3072, %s24_s25, [#allocation4], %s2909_s27, %s2909_s27, %s2910_s28  }
   0xd   :  { %2904 = dma.done.wait [#allocation4], 3072  }
   0xe   :  { %2905 = vsyncadd [#allocation4], 4294964224  ;;  %v2911_v0 = vmov 0   ;;  %vm191_vm0 = vcmask 1046528   ;;  %vm192_vm1 = vcmask 1047552   ;;  %v2912_v1 = vmov 65535  }
   0xf   :  { %2714 = vset.pattern.permute.xlu1 %v2911_v0  ;;  %2713 = vset.pattern.permute.xlu0 %v2911_v0  ;;  %v193_v2 = vsel %vm191_vm0, 4294967295, %v2912_v1  ;;  %v44_v3 = vld [vmem:[%s3737_s0 + $0x10] sm:$0xff]  ;;  %v42_v4 = vld [vmem:[%s3737_s0] sm:$0xff]  ;;  %v45_v5 = vld [vmem:[%s3737_s0 + $0x18] sm:$0xff]  ;;  %v3745_v24 = vmov 0.0   ;;  %v50_v25 = vlaneseq  ;;  %vm178_vm6 = vcmask 384000  }
  0x10   :  { %236 = vmatprep.mubr.bf16.mxu0 %v2911_v0  ;;  %59 = vperm.xlu1 %2714, %v44_v3   ;;  %v43_v6 = vld [vmem:[%s3737_s0 + $0x8] sm:$0xff]  ;;  %v194_v7 = vsel %vm192_vm1, %v193_v2, 0  ;;  %v2715_v8 = vld [vmem:[%s3738_s1 + $0x34] ss:$12 sps:$4 sm:$0xff]   ;;  %v2717_v9 = vld [vmem:[%s3738_s1 + $0x30] ss:$12 sps:$4 sm:$0xff]  }
  0x11   :  { %53 = vperm.xlu0 %2713, %v42_v4   ;;  %v47_v10 = vld [vmem:[%s3737_s0 + $0x28] sm:$0xff]  ;;  %v2718_v11 = vld [vmem:[%s3738_s1 + $0x38] ss:$12 sps:$4 sm:$0xff]   ;;  %v199_v13 = vand.u32 %v2715_v8, %v194_v7  ;;  %v196_v14 = vand.u32 %v2717_v9, %v194_v7  ;;  %v48_v20 = vld [vmem:[%s3737_s0 + $0x30] sm:$0xff]  ;;  %v51_v26 = vand.u32 127, %v50_v25  ;;  %vm2914_vm11 = vmmov 0  }
  0x12   :  { %v46_v12 = vld [vmem:[%s3737_s0 + $0x20] sm:$0xff]  ;;  %v202_v15 = vand.u32 %v2718_v11, %v194_v7  ;;  %v2719_v16 = vld [vmem:[%s3738_s1 + $0x1c] ss:$12 sps:$4 sm:$0xff]   ;;  %v3022_v38 = vld [vmem:[#allocation3 + $0xac] ss:$12 sps:$4 sm:$0xff]   ;;  %s2915_s12 = smov [#allocation6]  }
  0x13   :  { %214 = vmatprep.subr.bf16.mxu0 %v199_v13  ;;  %v2722_v17 = vld [vmem:[%s3738_s1 + $0x20] ss:$12 sps:$4 sm:$0xff]   ;;  %v49_v18 = vld [vmem:[%s3737_s0 + $0x38] sm:$0xff]  ;;  %v2723_v21 = vld [vmem:[%s3738_s1 + $0x4] ss:$12 sps:$4 sm:$0xff]   ;;  %s1868_s13 = sshll.u32 %s2915_s12, 4  ;;  %s1869_s13 = int_to_ptr.vmem [resolvable:$true] %s1868_s13 }
  0x14   :  { %62 = vperm.xlu1 %2714, %v45_v5   ;;  %215 = vmatpush1.bf16.msra.mxu0 %v196_v14  ;;  %v2721_v19 = vld [vmem:[%s3738_s1 + $0x18] ss:$12 sps:$4 sm:$0xff]   ;;  %v2726_v22 = vld [vmem:[%s3738_s1 + $0x8] ss:$12 sps:$4 sm:$0xff]   ;;  %v2725_v23 = vld [vmem:[%s3738_s1] ss:$12 sps:$4 sm:$0xff]   ;;  %p2889_p6 = scmp.lt.s32.totalorder %s1869_s13, %s1869_s13 }
  0x15   :  { %56 = vperm.xlu0 %2713, %v43_v6   ;;  %2191 = vmatprep.subr.bf16.mxu1 %v202_v15  ;;  %v3020_v35 = vld [vmem:[#allocation3 + $0xa8] ss:$12 sps:$4 sm:$0xff]   ;;  %v3030_v43 = vld [vmem:[#allocation3 + $0x90] ss:$12 sps:$4 sm:$0xff]   ;;  %v3042_v50 = vld [vmem:[#allocation3 + $0x78] ss:$12 sps:$4 sm:$0xff]  }
  0x16   :  { %2192 = vmatpush3.bf16.msra.mxu1 %v202_v15  ;;  %216 = vmatprep.subr.bf16.mxu0 %v2719_v16  ;;  %v3034_v45 = vld [vmem:[#allocation3 + $0x94] ss:$12 sps:$4 sm:$0xff]   ;;  %v3046_v52 = vld [vmem:[#allocation3 + $0x7c] ss:$12 sps:$4 sm:$0xff]   ;;  %v3056_v54 = vld [vmem:[#allocation3 + $0x64] ss:$12 sps:$4 sm:$0xff]  }
  0x17   :  { %2193 = vmatprep.subr.bf16.mxu1 %v2722_v17  ;;  %v3052_v53 = vld [vmem:[#allocation3 + $0x60] ss:$12 sps:$4 sm:$0xff]   ;;  %v3063_v55 = vld [vmem:[#allocation3 + $0x48] ss:$12 sps:$4 sm:$0xff]   ;;  %v3072_v57 = vld [vmem:[#allocation3 + $0x30] ss:$12 sps:$4 sm:$0xff]  }
  0x18   :  { %68 = vperm.xlu1 %2714, %v47_v10   ;;  %217 = vmatpush1.bf16.msra.mxu0 %v2721_v19  ;;  %v3067_v56 = vld [vmem:[#allocation3 + $0x4c] ss:$12 sps:$4 sm:$0xff]   ;;  %v3077_v58 = vld [vmem:[#allocation3 + $0x34] ss:$12 sps:$4 sm:$0xff]   ;;  %v3085_v60 = vld [vmem:[#allocation3 + $0x1c] ss:$12 sps:$4 sm:$0xff]  }
  0x19   :  { %65 = vperm.xlu0 %2713, %v46_v12   ;;  %218 = vmatprep.subr.bf16.mxu0 %v2723_v21  ;;  %v3081_v59 = vld [vmem:[#allocation3 + $0x18] ss:$12 sps:$4 sm:$0xff]   ;;  %v3090_v61 = vld [vmem:[#allocation3] ss:$12 sps:$4 sm:$0xff]   ;;  %v3100_v63 = vld [vmem:[#allocation3 + $0xb0] ss:$12 sps:$4 sm:$0xff]  }
  0x1a   :  { %2194 = vmatpush3.bf16.msra.mxu1 %v2722_v17  ;;  %v3096_v62 = vld [vmem:[#allocation3 + $0x4] ss:$12 sps:$4 sm:$0xff]   ;;  %v3118_v2 = vld [vmem:[#allocation3 + $0x80] ss:$12 sps:$4 sm:$0xff]   ;;  %v3124_v3 = vld [vmem:[#allocation3 + $0x68] ss:$12 sps:$4 sm:$0xff]  }
  0x1b   :  { %2195 = vmatprep.subr.bf16.mxu1 %v2726_v22  ;;  %v3108_v1 = vld [vmem:[#allocation3 + $0x98] ss:$12 sps:$4 sm:$0xff]   ;;  %v3130_v4 = vld [vmem:[#allocation3 + $0x50] ss:$12 sps:$4 sm:$0xff]   ;;  %v3142_v6 = vld [vmem:[#allocation3 + $0x20] ss:$12 sps:$4 sm:$0xff]  }
  0x1c   :  { %74 = vperm.xlu1 %2714, %v49_v18   ;;  %219 = vmatpush1.bf16.msra.mxu0 %v2725_v23  ;;  %v3136_v5 = vld [vmem:[#allocation3 + $0x38] ss:$12 sps:$4 sm:$0xff]   ;;  %v3148_v7 = vld [vmem:[#allocation3 + $0x8] ss:$12 sps:$4 sm:$0xff]   ;;  %v116_v9 = vld [vmem:[%s3740_s3] sm:$0x7] }
  0x1d   :  { %71 = vperm.xlu0 %2713, %v48_v20   ;;  %2205 = vmatprep.subr.bf16.mxu0 %v3745_v24  ;;  %vm1860_vm12 = vcmask 39936   ;;  %s2884_s14 = scalar_lea.vmem %s1869_s13, 128 }
  0x1e   :  { %2196 = vmatpush3.bf16.msra.mxu1 %v2726_v22  ;;  %p2885_p5 = scmp.ne.s32.totalorder %s1869_s13, %s2884_s14  ;;  %p2890_p7 = scmp.lt.s32.totalorder %s2884_s14, %s2884_s14 }
  0x1f   :  { %2225 = vmatprep.subr.bf16.mxu1 %v3745_v24 }
  0x20   :  { %p2891_p8 = por %p2890_p7, %p2889_p6 }
  0x22   :  { %p2892_p9 = pnand %p2891_p8, %p2885_p5 }
  0x8b   :  { %v60_v27 = vpop.permute.xlu1 %59 }
  0x8c   :  { %v54_v28 = vpop.permute.xlu0 %53  ;;  %vm78_vm2 = vcmp.eq.s32.totalorder %v51_v26, %v60_v27 }
  0x8d   :  { %vm76_vm3 = vcmp.eq.s32.totalorder %v51_v26, %v54_v28  ;;  %v1886_v29 = vsel %vm78_vm2, 1.0, %v3745_v24 }
  0x8e   :  { %v1884_v32 = vsel %vm76_vm3, 1.0, %v3745_v24 }
  0x8f   :  { %v63_v30 = vpop.permute.xlu1 %62 }
  0x90   :  { %v57_v31 = vpop.permute.xlu0 %56  ;;  %vm79_vm4 = vcmp.eq.s32.totalorder %v51_v26, %v63_v30 }
  0x91   :  { %vm77_vm5 = vcmp.eq.s32.totalorder %v51_v26, %v57_v31  ;;  %v1887_v33 = vsel %vm79_vm4, 1.0, %v3745_v24 }
  0x92   :  { %v1885_v34 = vsel %vm77_vm5, 1.0, %v3745_v24  ;;  %v101_v36 = vpack.c.bf16 %v1887_v33, %v1886_v29 }
  0x93   :  { %v100_v37 = vpack.c.bf16 %v1885_v34, %v1884_v32  ;;  %v69_v39 = vpop.permute.xlu1 %68 }
  0x94   :  { %v66_v40 = vpop.permute.xlu0 %65  ;;  %vm81_vm7 = vcmp.eq.s32.totalorder %v51_v26, %v69_v39 }
  0x95   :  { %vm80_vm8 = vcmp.eq.s32.totalorder %v51_v26, %v66_v40  ;;  %1901 = vmatmul.mubr.msk.bf16.vlgmr.msra.gmra.mxu0 %vm178_vm6, %v100_v37  ;;  %2197 = vmatprep.mubr.msk.bf16.mxu1 %vm178_vm6, %v100_v37  ;;  %v1889_v41 = vsel %vm81_vm7, 1.0, %v3745_v24 }
  0x96   :  { %v1888_v42 = vsel %vm80_vm8, 1.0, %v3745_v24  ;;  %2206 = vmatpush3.bf16.msra.mxu0 %v3020_v35  ;;  %2198 = vmatmul.mubr.msk.bf16.vlgmr.msra.gmra.mxu1 %vm178_vm6, %v101_v36 }
  0x97   :  { %v102_v44 = vpack.c.bf16 %v1889_v41, %v1888_v42  ;;  %2226 = vmatpush3.bf16.msra.mxu1 %v3022_v38  ;;  %2207 = vmatprep.subr.bf16.mxu0 %v3745_v24  ;;  %v75_v46 = vpop.permute.xlu1 %74 }
  0x98   :  { %v72_v47 = vpop.permute.xlu0 %71  ;;  %2227 = vmatprep.subr.bf16.mxu1 %v3745_v24  ;;  %246 = vmatprep.mubr.bf16.mxu0 %v2911_v0  ;;  %vm83_vm9 = vcmp.eq.s32.totalorder %v51_v26, %v75_v46 }
  0x99   :  { %vm82_vm10 = vcmp.eq.s32.totalorder %v51_v26, %v72_v47  ;;  %2201 = vmatprep.mubr.msk.bf16.mxu1 %vm178_vm6, %v102_v44  ;;  %v1891_v48 = vsel %vm83_vm9, 1.0, %v3745_v24 }
  0x9a   :  { %v1890_v49 = vsel %vm82_vm10, 1.0, %v3745_v24  ;;  %2208 = vmatpush3.bf16.msra.mxu0 %v3030_v43 }
  0x9b   :  { %v103_v51 = vpack.c.bf16 %v1891_v48, %v1890_v49  ;;  %2228 = vmatpush3.bf16.msra.mxu1 %v3034_v45  ;;  %2209 = vmatprep.subr.bf16.mxu0 %v3745_v24 }
  0x9c   :  { %2229 = vmatprep.subr.bf16.mxu1 %v3745_v24 }
  0x9d   :  { %1902 = vmatmul.mubr.msk.bf16.gmra.mxu0 %vm178_vm6, %v101_v36 }
  0x9e   :  { %2210 = vmatpush3.bf16.msra.mxu0 %v3042_v50  ;;  %2202 = vmatmul.mubr.msk.bf16.gmra.mxu1 %vm178_vm6, %v103_v51 }
  0x9f   :  { %2230 = vmatpush3.bf16.msra.mxu1 %v3046_v52  ;;  %2211 = vmatprep.subr.bf16.mxu0 %v3745_v24 }
  0xa0   :  { %2231 = vmatprep.subr.bf16.mxu1 %v3745_v24  ;;  %256 = vmatprep.mubr.bf16.mxu0 %v2911_v0 }
  0xa1   :  { %2241 = vmatprep.mubr.msk.bf16.mxu1 %vm2914_vm11, %v3745_v24 }
  0xa2   :  { %2212 = vmatpush3.bf16.msra.mxu0 %v3052_v53 }
  0xa3   :  { %2232 = vmatpush3.bf16.msra.mxu1 %v3056_v54  ;;  %2213 = vmatprep.subr.bf16.mxu0 %v3745_v24 }
  0xa4   :  { %2233 = vmatprep.subr.bf16.mxu1 %v3745_v24 }
  0xa5   :  { %1903 = vmatmul.mubr.msk.bf16.gmra.mxu0 %vm178_vm6, %v102_v44 }
  0xa6   :  { %2214 = vmatpush3.bf16.msra.mxu0 %v3063_v55  ;;  %266 = vmatprep.mubr.bf16.mxu0 %v2911_v0 }
  0xa7   :  { %2234 = vmatpush3.bf16.msra.mxu1 %v3067_v56  ;;  %2215 = vmatprep.subr.bf16.mxu0 %v3745_v24 }
  0xa8   :  { %2235 = vmatprep.subr.bf16.mxu1 %v3745_v24 }
  0xaa   :  { %2216 = vmatpush3.bf16.msra.mxu0 %v3072_v57 }
  0xab   :  { %2236 = vmatpush3.bf16.msra.mxu1 %v3077_v58  ;;  %2217 = vmatprep.subr.bf16.mxu0 %v3745_v24 }
  0xac   :  { %2237 = vmatprep.subr.bf16.mxu1 %v3745_v24 }
  0xad   :  { %1904 = vmatmul.mubr.msk.bf16.gmra.mxu0 %vm178_vm6, %v103_v51 }
  0xae   :  { %2218 = vmatpush3.bf16.msra.mxu0 %v3081_v59  ;;  %2221 = vmatprep.mubr.msk.bf16.mxu0 %vm2914_vm11, %v3745_v24 }
  0xaf   :  { %2238 = vmatpush3.bf16.msra.mxu1 %v3085_v60  ;;  %2219 = vmatprep.subr.bf16.mxu0 %v3745_v24 }
  0xb0   :  { %2239 = vmatprep.subr.bf16.mxu1 %v3745_v24 }
  0xb2   :  { %2220 = vmatpush3.bf16.msra.mxu0 %v3090_v61 }
  0xb3   :  { %2240 = vmatpush3.bf16.msra.mxu1 %v3096_v62  ;;  %2245 = vmatprep.subr.bf16.mxu0 %v3745_v24 }
  0xb4   :  { %2265 = vmatprep.subr.bf16.mxu1 %v3745_v24 }
  0xb5   :  { %2222 = vmatmul.mubr.bf16.vlgmr.msra.gmra.mxu0 %v2911_v0 }
  0xb6   :  { %2242 = vmatmul.mubr.bf16.vlgmr.msra.gmra.mxu1 %v2911_v0  ;;  %2246 = vmatpush3.bf16.msra.mxu0 %v3100_v63 }
  0xb7   :  { %2247 = vmatprep.subr.bf16.mxu0 %v3745_v24  ;;  %2261 = vmatprep.mubr.msk.bf16.mxu0 %vm2914_vm11, %v3745_v24 }
  0xb8   :  { %2266 = vmatpush3.bf16.msra.mxu1 %v3020_v35  ;;  %2281 = vmatprep.mubr.msk.bf16.mxu1 %vm2914_vm11, %v3745_v24 }
  0xb9   :  { %2267 = vmatprep.subr.bf16.mxu1 %v3745_v24 }
  0xba   :  { %2248 = vmatpush3.bf16.msra.mxu0 %v3108_v1 }
  0xbb   :  { %2249 = vmatprep.subr.bf16.mxu0 %v3745_v24 }
  0xbc   :  { %2268 = vmatpush3.bf16.msra.mxu1 %v3030_v43 }
  0xbd   :  { %2269 = vmatprep.subr.bf16.mxu1 %v3745_v24 }
  0xbe   :  { %2250 = vmatpush3.bf16.msra.mxu0 %v3118_v2 }
  0xbf   :  { %2251 = vmatprep.subr.bf16.mxu0 %v3745_v24 }
  0xc0   :  { %2270 = vmatpush3.bf16.msra.mxu1 %v3042_v50 }
  0xc1   :  { %2271 = vmatprep.subr.bf16.mxu1 %v3745_v24 }
  0xc2   :  { %2252 = vmatpush3.bf16.msra.mxu0 %v3124_v3 }
  0xc3   :  { %2253 = vmatprep.subr.bf16.mxu0 %v3745_v24 }
  0xc4   :  { %2272 = vmatpush3.bf16.msra.mxu1 %v3052_v53 }
  0xc5   :  { %2273 = vmatprep.subr.bf16.mxu1 %v3745_v24 }
  0xc6   :  { %2254 = vmatpush3.bf16.msra.mxu0 %v3130_v4 }
  0xc7   :  { %2255 = vmatprep.subr.bf16.mxu0 %v3745_v24 }
  0xc8   :  { %2274 = vmatpush3.bf16.msra.mxu1 %v3063_v55 }
  0xc9   :  { %2275 = vmatprep.subr.bf16.mxu1 %v3745_v24 }
  0xca   :  { %2256 = vmatpush3.bf16.msra.mxu0 %v3136_v5 }
  0xcb   :  { %2257 = vmatprep.subr.bf16.mxu0 %v3745_v24 }
  0xcc   :  { %2276 = vmatpush3.bf16.msra.mxu1 %v3072_v57 }
  0xcd   :  { %2277 = vmatprep.subr.bf16.mxu1 %v3745_v24 }
  0xce   :  { %2258 = vmatpush3.bf16.msra.mxu0 %v3142_v6 }
  0xcf   :  { %2259 = vmatprep.subr.bf16.mxu0 %v3745_v24 }
  0xd0   :  { %2278 = vmatpush3.bf16.msra.mxu1 %v3081_v59 }
  0xd1   :  { %2279 = vmatprep.subr.bf16.mxu1 %v3745_v24 }
  0xd2   :  { %2260 = vmatpush3.bf16.msra.mxu0 %v3148_v7 }
  0xd3   :  { %2285 = vmatprep.subr.bf16.mxu0 %v3745_v24 }
  0xd4   :  { %2280 = vmatpush3.bf16.msra.mxu1 %v3090_v61 }
  0xd5   :  { %2262 = vmatmul.mubr.bf16.vlgmr.msra.gmra.mxu0 %v2911_v0  ;;  %2305 = vmatprep.subr.bf16.mxu1 %v3745_v24  ;;  %v119_v0 = vshrl.u32 %v50_v25, 7 }
  0xd6   :  { %2286 = vmatpush3.bf16.msra.mxu0 %v3022_v38  ;;  %2301 = vmatprep.mubr.msk.bf16.mxu0 %vm2914_vm11, %v3745_v24 }
  0xd7   :  { %2287 = vmatprep.subr.bf16.mxu0 %v3745_v24  ;;  %v128_v8 = vsub.s32 2, %v119_v0  ;;  %v120_v11 = vsub.s32 0, %v119_v0  ;;  %v124_v14 = vsub.s32 1, %v119_v0 }
  0xd9   :  { %v3180_v10 = vrot.slane %v116_v9, %v128_v8  ;;  %v121_v17 = vrot.slane %v116_v9, %v120_v11  ;;  %v125_v20 = vrot.slane %v116_v9, %v124_v14 }
  0xda   :  { %2288 = vmatpush3.bf16.msra.mxu0 %v3034_v45 }
  0xdb   :  { %2289 = vmatprep.subr.bf16.mxu0 %v3745_v24 }
  0xde   :  { %2290 = vmatpush3.bf16.msra.mxu0 %v3046_v52 }
  0xdf   :  { %2291 = vmatprep.subr.bf16.mxu0 %v3745_v24 }
  0xe2   :  { %2292 = vmatpush3.bf16.msra.mxu0 %v3056_v54 }
  0xe3   :  { %2293 = vmatprep.subr.bf16.mxu0 %v3745_v24 }
  0xe6   :  { %2294 = vmatpush3.bf16.msra.mxu0 %v3067_v56 }
  0xe7   :  { %2295 = vmatprep.subr.bf16.mxu0 %v3745_v24 }
  0xea   :  { %2296 = vmatpush3.bf16.msra.mxu0 %v3077_v58 }
  0xeb   :  { %2297 = vmatprep.subr.bf16.mxu0 %v3745_v24 }
  0xee   :  { %2298 = vmatpush3.bf16.msra.mxu0 %v3085_v60 }
  0xef   :  { %2299 = vmatprep.subr.bf16.mxu0 %v3745_v24 }
  0xf2   :  { %2300 = vmatpush3.bf16.msra.mxu0 %v3096_v62 }
  0xf3   :  { %2325 = vmatprep.subr.bf16.mxu0 %v3745_v24 }
 0x155   :  { %v238_v12 = vpop.f32.mrf.mxu0 }
 0x156   :  { %v2199_v13 = vpop.f32.mrf.mxu1 }
 0x157   :  { %v3183_v15 = vadd.f32 %v2199_v13, %v3180_v10  ;;  %v240_v16 = vpop.f32.mrf.mxu0 }
 0x158   :  { %v3185_v18 = vpop.f32.mrf.mxu1  ;;  %v241_v24 = vadd.f32 %v240_v16, %v125_v20 }
 0x159   :  { %v242_v19 = vpop.f32.mrf.mxu0 }
 0x15a   :  { %v3187_v21 = vadd.f32 %v242_v19, %v121_v17  ;;  %v2200_v22 = vpop.f32.mrf.mxu1 }
 0x15b   :  { %v3190_v23 = vadd.f32 %v2200_v22, %v3180_v10  ;;  %v244_v25 = vpop.f32.mrf.mxu0 }
 0x15c   :  { %v3192_v26 = vadd.f32 %v244_v25, %v125_v20  ;;  %v314_v27 = vpop.f32.mrf.mxu1 }
 0x15d   :  { %v3195_v28 = vadd.f32 %v314_v27, %v3180_v10  ;;  %v248_v29 = vpop.f32.mrf.mxu0 }
 0x15e   :  { %v3197_v30 = vadd.f32 %v248_v29, %v121_v17  ;;  %v2203_v31 = vpop.f32.mrf.mxu1 }
 0x15f   :  { %v3200_v32 = vadd.f32 %v2203_v31, %v3180_v10  ;;  %v250_v33 = vpop.f32.mrf.mxu0 }
 0x160   :  { %v3202_v34 = vadd.f32 %v250_v33, %v125_v20  ;;  %v327_v36 = vpop.f32.mrf.mxu1 }
 0x161   :  { %3747 = vst [vmem:[#allocation9_spill] sm:$0xff] %v3200_v32  ;;  %v3205_v37 = vadd.f32 %v327_v36, %v3180_v10  ;;  %v252_v39 = vpop.f32.mrf.mxu0  ;;  %v239_v36 = vadd.f32 %v238_v12, %v121_v17 }
 0x162   :  { %v3207_v40 = vadd.f32 %v252_v39, %v121_v17  ;;  %v2204_v41 = vpop.f32.mrf.mxu1 }
 0x163   :  { %v3210_v42 = vadd.f32 %v2204_v41, %v3180_v10  ;;  %v254_v44 = vpop.f32.mrf.mxu0 }
 0x164   :  { %v3212_v46 = vadd.f32 %v254_v44, %v125_v20  ;;  %v330_v47 = vpop.f32.mrf.mxu1 }
 0x165   :  { %3748 = vst [vmem:[#allocation10_spill] sm:$0xff] %v3210_v42  ;;  %v3215_v48 = vadd.f32 %v330_v47, %v3180_v10  ;;  %v258_v49 = vpop.f32.mrf.mxu0 }
 0x166   :  { %v3217_v51 = vadd.f32 %v258_v49, %v121_v17 }
 0x167   :  { %v260_v0 = vpop.f32.mrf.mxu0 }
 0x168   :  { %v3219_v8 = vadd.f32 %v260_v0, %v125_v20 }
 0x169   :  { %v262_v9 = vpop.f32.mrf.mxu0 }
 0x16a   :  { %v3221_v11 = vadd.f32 %v262_v9, %v121_v17 }
 0x16b   :  { %v264_v13 = vpop.f32.mrf.mxu0 }
 0x16c   :  { %v3223_v14 = vadd.f32 %v264_v13, %v125_v20 }
 0x16d   :  { %v268_v19 = vpop.f32.mrf.mxu0 }
 0x16e   :  { %v3225_v22 = vadd.f32 %v268_v19, %v121_v17 }
 0x16f   :  { %v270_v25 = vpop.f32.mrf.mxu0 }
 0x170   :  { %v3227_v27 = vadd.f32 %v270_v25, %v125_v20 }
 0x171   :  { %v272_v29 = vpop.f32.mrf.mxu0 }
 0x172   :  { %3749 = vst [vmem:[#allocation11_spill] sm:$0xff] %v3227_v27  ;;  %v3229_v31 = vadd.f32 %v272_v29, %v121_v17  ;;  %v3236_v17 = vld [vmem:[%s3741_s4] ss:$0 sm:$0xff] }
 0x173   :  { %v274_v33 = vpop.f32.mrf.mxu0 }
 0x174   :  { %3750 = vst [vmem:[#allocation12_spill] sm:$0xff] %v3229_v31  ;;  %v3231_v39 = vadd.f32 %v274_v33, %v125_v20 }
 0x175   :  { %v471_v41 = vpop.f32.mrf.mxu0 }
 0x176   :  { %v597_v44 = vadd.f32 %v471_v41, %v239_v36  ;;  %v575_v47 = vpop.f32.mrf.mxu1 }
 0x177   :  { %v2223_v49 = vpop.f32.mrf.mxu0  ;;  %v604_v25 = vadd.f32 %v575_v47, %v241_v24  ;;  %v312_v24 = vadd.f32 %v3185_v18, %v3180_v10  ;;  %v3751_v10 = vmov 0.0  }
 0x178   :  { %v1925_v0 = vmul.f32 -1.442695, %v597_v44  ;;  %v2243_v9 = vpop.f32.mrf.mxu1 }
 0x179   :  { %v474_v13 = vpop.f32.mrf.mxu0  ;;  %v1926_v27 = vmul.f32 -1.442695, %v604_v25 }
 0x17a   :  { %2759 = vpow2.f32 %v1925_v0  ;;  %v578_v19 = vpop.f32.mrf.mxu1 }
 0x17b   :  { %v2224_v42 = vpop.f32.mrf.mxu0  ;;  %2761 = vpow2.f32 %v1926_v27 }
 0x17c   :  { %v2244_v32 = vpop.f32.mrf.mxu1 }
 0x187   :  { %v2760_v29 = vpop.eup %2759 }
 0x188   :  { %v601_v31 = vadd.f32 1.0, %v2760_v29  ;;  %v2762_v12 = vpop.eup %2761 }
 0x189   :  { %v608_v33 = vadd.f32 1.0, %v2762_v12 }
 0x18a   :  { %2763 = vrcp.f32 %v601_v31 }
 0x18b   :  { %2765 = vrcp.f32 %v608_v33 }
 0x195   :  { %v699_v36 = vpop.f32.mrf.mxu0 }
 0x196   :  { %v700_v16 = vadd.f32 %v3236_v17, %v699_v36 }
 0x197   :  { %v2764_v20 = vpop.eup %2763  ;;  %v2263_v41 = vpop.f32.mrf.mxu0 }
 0x198   :  { %v705_v32 = vmul.f32 %v2764_v20, %v700_v16  ;;  %v2766_v44 = vpop.eup %2765 }
 0x199   :  { %v702_v42 = vpop.f32.mrf.mxu0  ;;  %v708_v47 = vsub.f32 1.0, %v2766_v44  ;;  %v710_v9 = vmul.f32 0.0, %v2766_v44 }
 0x19a   :  { %v706_v27 = vadd.f32 %v705_v32, %v312_v24 }
 0x19b   :  { %v2264_v31 = vpop.f32.mrf.mxu0 }
 0x19c   :  { %2767 = vtanh.f32 %v706_v27 }
 0x1a9   :  { %v2768_v49 = vpop.eup %2767 }
 0x1aa   :  { %v709_v0 = vmul.f32 %v2768_v49, %v708_v47 }
 0x1ac   :  { %v3241_v13 = vadd.f32 %v710_v9, %v709_v0 }
 0x1ae   :  { %v718_v19 = vpack.c.bf16 %v3241_v13, %v3241_v13 }
 0x1b0   :  { %2282 = vmatmul.mubr.bf16.vlgmr.msra.gmra.mxu1 %v718_v19  ;;  %2302 = vmatmul.mubr.bf16.vlgmr.msra.gmra.mxu0 %v718_v19 }
 0x1b1   :  { %2306 = vmatpush3.bf16.msra.mxu1 %v3100_v63  ;;  %2321 = vmatprep.mubr.msk.bf16.mxu1 %vm2914_vm11, %v3751_v10 }
 0x1b2   :  { %2307 = vmatprep.subr.bf16.mxu1 %v3751_v10  ;;  %2326 = vmatpush3.bf16.msra.mxu0 %v3020_v35 }
 0x1b3   :  { %2327 = vmatprep.subr.bf16.mxu0 %v3751_v10  ;;  %2341 = vmatprep.mubr.msk.bf16.mxu0 %vm2914_vm11, %v3751_v10 }
 0x1b5   :  { %2308 = vmatpush3.bf16.msra.mxu1 %v3108_v1 }
 0x1b6   :  { %2309 = vmatprep.subr.bf16.mxu1 %v3751_v10  ;;  %2328 = vmatpush3.bf16.msra.mxu0 %v3030_v43 }
 0x1b7   :  { %2329 = vmatprep.subr.bf16.mxu0 %v3751_v10 }
 0x1b9   :  { %2310 = vmatpush3.bf16.msra.mxu1 %v3118_v2 }
 0x1ba   :  { %2311 = vmatprep.subr.bf16.mxu1 %v3751_v10  ;;  %2330 = vmatpush3.bf16.msra.mxu0 %v3042_v50 }
 0x1bb   :  { %2331 = vmatprep.subr.bf16.mxu0 %v3751_v10 }
 0x1bd   :  { %2312 = vmatpush3.bf16.msra.mxu1 %v3124_v3 }
 0x1be   :  { %2313 = vmatprep.subr.bf16.mxu1 %v3751_v10  ;;  %2332 = vmatpush3.bf16.msra.mxu0 %v3052_v53 }
 0x1bf   :  { %2333 = vmatprep.subr.bf16.mxu0 %v3751_v10 }
 0x1c1   :  { %2314 = vmatpush3.bf16.msra.mxu1 %v3130_v4 }
 0x1c2   :  { %2315 = vmatprep.subr.bf16.mxu1 %v3751_v10  ;;  %2334 = vmatpush3.bf16.msra.mxu0 %v3063_v55 }
 0x1c3   :  { %2335 = vmatprep.subr.bf16.mxu0 %v3751_v10 }
 0x1c5   :  { %2316 = vmatpush3.bf16.msra.mxu1 %v3136_v5 }
 0x1c6   :  { %2317 = vmatprep.subr.bf16.mxu1 %v3751_v10  ;;  %2336 = vmatpush3.bf16.msra.mxu0 %v3072_v57 }
 0x1c7   :  { %2337 = vmatprep.subr.bf16.mxu0 %v3751_v10 }
 0x1c9   :  { %2318 = vmatpush3.bf16.msra.mxu1 %v3142_v6 }
 0x1ca   :  { %2319 = vmatprep.subr.bf16.mxu1 %v3751_v10  ;;  %2338 = vmatpush3.bf16.msra.mxu0 %v3081_v59 }
 0x1cb   :  { %2339 = vmatprep.subr.bf16.mxu0 %v3751_v10 }
 0x1cd   :  { %2320 = vmatpush3.bf16.msra.mxu1 %v3148_v7 }
 0x1ce   :  { %2345 = vmatprep.subr.bf16.mxu1 %v3751_v10  ;;  %2340 = vmatpush3.bf16.msra.mxu0 %v3090_v61 }
 0x1cf   :  { %2365 = vmatprep.subr.bf16.mxu0 %v3751_v10 }
 0x1d0   :  { %2322 = vmatmul.mubr.bf16.vlgmr.msra.gmra.mxu1 %v718_v19 }
 0x1d1   :  { %2346 = vmatpush3.bf16.msra.mxu1 %v3022_v38  ;;  %2361 = vmatprep.mubr.msk.bf16.mxu1 %vm2914_vm11, %v3751_v10 }
 0x1d2   :  { %2347 = vmatprep.subr.bf16.mxu1 %v3751_v10 }
 0x1d5   :  { %2348 = vmatpush3.bf16.msra.mxu1 %v3034_v45 }
 0x1d6   :  { %2349 = vmatprep.subr.bf16.mxu1 %v3751_v10 }
 0x1d9   :  { %2350 = vmatpush3.bf16.msra.mxu1 %v3046_v52 }
 0x1da   :  { %2351 = vmatprep.subr.bf16.mxu1 %v3751_v10 }
 0x1dd   :  { %2352 = vmatpush3.bf16.msra.mxu1 %v3056_v54 }
 0x1de   :  { %2353 = vmatprep.subr.bf16.mxu1 %v3751_v10 }
 0x1e1   :  { %2354 = vmatpush3.bf16.msra.mxu1 %v3067_v56 }
 0x1e2   :  { %2355 = vmatprep.subr.bf16.mxu1 %v3751_v10 }
 0x1e5   :  { %2356 = vmatpush3.bf16.msra.mxu1 %v3077_v58 }
 0x1e6   :  { %2357 = vmatprep.subr.bf16.mxu1 %v3751_v10 }
 0x1e9   :  { %2358 = vmatpush3.bf16.msra.mxu1 %v3085_v60 }
 0x1ea   :  { %2359 = vmatprep.subr.bf16.mxu1 %v3751_v10 }
 0x1ed   :  { %2360 = vmatpush3.bf16.msra.mxu1 %v3096_v62 }
 0x1ee   :  { %2385 = vmatprep.subr.bf16.mxu1 %v3751_v10 }
 0x270   :  { %v753_v18 = vpop.f32.mrf.mxu1  ;;  %v793_v25 = vpop.f32.mrf.mxu0 }
 0x271   :  { %v799_v29 = vadd.f32 %v753_v18, %v3187_v21  ;;  %v806_v32 = vadd.f32 %v793_v25, %v3192_v26 }
 0x272   :  { %v2283_v12 = vpop.f32.mrf.mxu1  ;;  %v2303_v33 = vpop.f32.mrf.mxu0 }
 0x273   :  { %v1936_v36 = vmul.f32 -1.442695, %v799_v29  ;;  %v1937_v42 = vmul.f32 -1.442695, %v806_v32 }
 0x274   :  { %v756_v16 = vpop.f32.mrf.mxu1  ;;  %v796_v20 = vpop.f32.mrf.mxu0 }
 0x275   :  { %2769 = vpow2.f32 %v1936_v36 }
 0x276   :  { %v2284_v41 = vpop.f32.mrf.mxu1  ;;  %v2304_v24 = vpop.f32.mrf.mxu0  ;;  %2771 = vpow2.f32 %v1937_v42 }
 0x282   :  { %v2770_v27 = vpop.eup %2769 }
 0x283   :  { %v803_v31 = vadd.f32 1.0, %v2770_v27  ;;  %v2772_v44 = vpop.eup %2771 }
 0x284   :  { %v810_v47 = vadd.f32 1.0, %v2772_v44 }
 0x285   :  { %2773 = vrcp.f32 %v803_v31 }
 0x286   :  { %2775 = vrcp.f32 %v810_v47 }
 0x290   :  { %v847_v49 = vpop.f32.mrf.mxu1 }
 0x291   :  { %v848_v21 = vadd.f32 %v3236_v17, %v847_v49 }
 0x292   :  { %v2774_v0 = vpop.eup %2773  ;;  %v2323_v9 = vpop.f32.mrf.mxu1 }
 0x293   :  { %v853_v19 = vmul.f32 %v2774_v0, %v848_v21  ;;  %v2776_v26 = vpop.eup %2775 }
 0x294   :  { %v850_v18 = vpop.f32.mrf.mxu1  ;;  %v856_v25 = vsub.f32 1.0, %v2776_v26  ;;  %v858_v16 = vmul.f32 %v2776_v26, %v3241_v13 }
 0x295   :  { %v854_v29 = vadd.f32 %v853_v19, %v3195_v28 }
 0x296   :  { %v2324_v12 = vpop.f32.mrf.mxu1 }
 0x297   :  { %2777 = vtanh.f32 %v854_v29 }
 0x2a4   :  { %v2778_v33 = vpop.eup %2777 }
 0x2a5   :  { %v857_v36 = vmul.f32 %v2778_v33, %v856_v25 }
 0x2a7   :  { %v3304_v20 = vadd.f32 %v858_v16, %v857_v36 }
 0x2a9   :  { %v866_v41 = vpack.c.bf16 %v3304_v20, %v3304_v20 }
 0x2ab   :  { %2342 = vmatmul.mubr.bf16.vlgmr.msra.gmra.mxu0 %v866_v41  ;;  %2362 = vmatmul.mubr.bf16.vlgmr.msra.gmra.mxu1 %v866_v41 }
 0x2ac   :  { %2366 = vmatpush3.bf16.msra.mxu0 %v3100_v63  ;;  %2381 = vmatprep.mubr.msk.bf16.mxu0 %vm2914_vm11, %v3751_v10 }
 0x2ad   :  { %2367 = vmatprep.subr.bf16.mxu0 %v3751_v10  ;;  %2386 = vmatpush3.bf16.msra.mxu1 %v3020_v35 }
 0x2ae   :  { %2387 = vmatprep.subr.bf16.mxu1 %v3751_v10  ;;  %2401 = vmatprep.mubr.msk.bf16.mxu1 %vm2914_vm11, %v3751_v10 }
 0x2b0   :  { %2368 = vmatpush3.bf16.msra.mxu0 %v3108_v1 }
 0x2b1   :  { %2369 = vmatprep.subr.bf16.mxu0 %v3751_v10  ;;  %2388 = vmatpush3.bf16.msra.mxu1 %v3030_v43 }
 0x2b2   :  { %2389 = vmatprep.subr.bf16.mxu1 %v3751_v10 }
 0x2b4   :  { %2370 = vmatpush3.bf16.msra.mxu0 %v3118_v2 }
 0x2b5   :  { %2371 = vmatprep.subr.bf16.mxu0 %v3751_v10  ;;  %2390 = vmatpush3.bf16.msra.mxu1 %v3042_v50 }
 0x2b6   :  { %2391 = vmatprep.subr.bf16.mxu1 %v3751_v10 }
 0x2b8   :  { %2372 = vmatpush3.bf16.msra.mxu0 %v3124_v3 }
 0x2b9   :  { %2373 = vmatprep.subr.bf16.mxu0 %v3751_v10  ;;  %2392 = vmatpush3.bf16.msra.mxu1 %v3052_v53 }
 0x2ba   :  { %2393 = vmatprep.subr.bf16.mxu1 %v3751_v10 }
 0x2bc   :  { %2374 = vmatpush3.bf16.msra.mxu0 %v3130_v4 }
 0x2bd   :  { %2375 = vmatprep.subr.bf16.mxu0 %v3751_v10  ;;  %2394 = vmatpush3.bf16.msra.mxu1 %v3063_v55 }
 0x2be   :  { %2395 = vmatprep.subr.bf16.mxu1 %v3751_v10 }
 0x2c0   :  { %2376 = vmatpush3.bf16.msra.mxu0 %v3136_v5 }
 0x2c1   :  { %2377 = vmatprep.subr.bf16.mxu0 %v3751_v10  ;;  %2396 = vmatpush3.bf16.msra.mxu1 %v3072_v57 }
 0x2c2   :  { %2397 = vmatprep.subr.bf16.mxu1 %v3751_v10 }
 0x2c4   :  { %2378 = vmatpush3.bf16.msra.mxu0 %v3142_v6 }
 0x2c5   :  { %2379 = vmatprep.subr.bf16.mxu0 %v3751_v10  ;;  %2398 = vmatpush3.bf16.msra.mxu1 %v3081_v59 }
 0x2c6   :  { %2399 = vmatprep.subr.bf16.mxu1 %v3751_v10 }
 0x2c8   :  { %2380 = vmatpush3.bf16.msra.mxu0 %v3148_v7 }
 0x2c9   :  { %2405 = vmatprep.subr.bf16.mxu0 %v3751_v10  ;;  %2400 = vmatpush3.bf16.msra.mxu1 %v3090_v61 }
 0x2ca   :  { %2425 = vmatprep.subr.bf16.mxu1 %v3751_v10 }
 0x2cb   :  { %2382 = vmatmul.mubr.bf16.vlgmr.msra.gmra.mxu0 %v866_v41 }
 0x2cc   :  { %2406 = vmatpush3.bf16.msra.mxu0 %v3022_v38  ;;  %2421 = vmatprep.mubr.msk.bf16.mxu0 %vm2914_vm11, %v3751_v10 }
 0x2cd   :  { %2407 = vmatprep.subr.bf16.mxu0 %v3751_v10 }
 0x2d0   :  { %2408 = vmatpush3.bf16.msra.mxu0 %v3034_v45 }
 0x2d1   :  { %2409 = vmatprep.subr.bf16.mxu0 %v3751_v10 }
 0x2d4   :  { %2410 = vmatpush3.bf16.msra.mxu0 %v3046_v52 }
 0x2d5   :  { %2411 = vmatprep.subr.bf16.mxu0 %v3751_v10 }
 0x2d8   :  { %2412 = vmatpush3.bf16.msra.mxu0 %v3056_v54 }
 0x2d9   :  { %2413 = vmatprep.subr.bf16.mxu0 %v3751_v10 }
 0x2dc   :  { %2414 = vmatpush3.bf16.msra.mxu0 %v3067_v56 }
 0x2dd   :  { %2415 = vmatprep.subr.bf16.mxu0 %v3751_v10 }
 0x2e0   :  { %2416 = vmatpush3.bf16.msra.mxu0 %v3077_v58 }
 0x2e1   :  { %2417 = vmatprep.subr.bf16.mxu0 %v3751_v10 }
 0x2e4   :  { %2418 = vmatpush3.bf16.msra.mxu0 %v3085_v60 }
 0x2e5   :  { %2419 = vmatprep.subr.bf16.mxu0 %v3751_v10 }
 0x2e8   :  { %2420 = vmatpush3.bf16.msra.mxu0 %v3096_v62 }
 0x2e9   :  { %2445 = vmatprep.subr.bf16.mxu0 %v3751_v10 }
 0x36b   :  { %v901_v28 = vpop.f32.mrf.mxu0  ;;  %v941_v13 = vpop.f32.mrf.mxu1 }
 0x36c   :  { %v947_v24 = vadd.f32 %v901_v28, %v3197_v30  ;;  %v954_v21 = vadd.f32 %v941_v13, %v3202_v34 }
 0x36d   :  { %v2343_v32 = vpop.f32.mrf.mxu0  ;;  %v2363_v42 = vpop.f32.mrf.mxu1 }
 0x36e   :  { %v1938_v27 = vmul.f32 -1.442695, %v947_v24  ;;  %v1939_v0 = vmul.f32 -1.442695, %v954_v21 }
 0x36f   :  { %v904_v31 = vpop.f32.mrf.mxu0  ;;  %v944_v44 = vpop.f32.mrf.mxu1 }
 0x370   :  { %2779 = vpow2.f32 %v1938_v27 }
 0x371   :  { %v2344_v47 = vpop.f32.mrf.mxu0  ;;  %v2364_v49 = vpop.f32.mrf.mxu1  ;;  %2781 = vpow2.f32 %v1939_v0 }
 0x37d   :  { %v2780_v9 = vpop.eup %2779 }
 0x37e   :  { %v951_v19 = vadd.f32 1.0, %v2780_v9  ;;  %v2782_v18 = vpop.eup %2781 }
 0x37f   :  { %v958_v29 = vadd.f32 1.0, %v2782_v18 }
 0x380   :  { %2783 = vrcp.f32 %v951_v19 }
 0x381   :  { %2785 = vrcp.f32 %v958_v29 }
 0x38b   :  { %v995_v12 = vpop.f32.mrf.mxu0 }
 0x38c   :  { %v996_v30 = vadd.f32 %v3236_v17, %v995_v12 }
 0x38d   :  { %v2784_v26 = vpop.eup %2783  ;;  %v2383_v25 = vpop.f32.mrf.mxu0 }
 0x38e   :  { %v1001_v33 = vmul.f32 %v2784_v26, %v996_v30  ;;  %v2786_v34 = vpop.eup %2785 }
 0x38f   :  { %v998_v36 = vpop.f32.mrf.mxu0  ;;  %v1004_v28 = vsub.f32 1.0, %v2786_v34  ;;  %v1006_v32 = vmul.f32 %v2786_v34, %v3304_v20 }
 0x390   :  { %v1002_v16 = vadd.f32 %v1001_v33, %v3183_v15 }
 0x391   :  { %v2384_v41 = vpop.f32.mrf.mxu0 }
 0x392   :  { %2787 = vtanh.f32 %v1002_v16 }
 0x39f   :  { %v2788_v13 = vpop.eup %2787 }
 0x3a0   :  { %v1005_v24 = vmul.f32 %v2788_v13, %v1004_v28 }
 0x3a2   :  { %v3367_v42 = vadd.f32 %v1006_v32, %v1005_v24 }
 0x3a4   :  { %v1014_v27 = vpack.c.bf16 %v3367_v42, %v3367_v42 }
 0x3a6   :  { %2402 = vmatmul.mubr.bf16.vlgmr.msra.gmra.mxu1 %v1014_v27  ;;  %2422 = vmatmul.mubr.bf16.vlgmr.msra.gmra.mxu0 %v1014_v27 }
 0x3a7   :  { %2426 = vmatpush3.bf16.msra.mxu1 %v3100_v63  ;;  %2441 = vmatprep.mubr.msk.bf16.mxu1 %vm2914_vm11, %v3751_v10 }
 0x3a8   :  { %2427 = vmatprep.subr.bf16.mxu1 %v3751_v10  ;;  %2446 = vmatpush3.bf16.msra.mxu0 %v3020_v35 }
 0x3a9   :  { %2447 = vmatprep.subr.bf16.mxu0 %v3751_v10  ;;  %2461 = vmatprep.mubr.msk.bf16.mxu0 %vm2914_vm11, %v3751_v10 }
 0x3ab   :  { %2428 = vmatpush3.bf16.msra.mxu1 %v3108_v1 }
 0x3ac   :  { %2429 = vmatprep.subr.bf16.mxu1 %v3751_v10  ;;  %2448 = vmatpush3.bf16.msra.mxu0 %v3030_v43 }
 0x3ad   :  { %2449 = vmatprep.subr.bf16.mxu0 %v3751_v10 }
 0x3af   :  { %2430 = vmatpush3.bf16.msra.mxu1 %v3118_v2 }
 0x3b0   :  { %2431 = vmatprep.subr.bf16.mxu1 %v3751_v10  ;;  %2450 = vmatpush3.bf16.msra.mxu0 %v3042_v50 }
 0x3b1   :  { %2451 = vmatprep.subr.bf16.mxu0 %v3751_v10 }
 0x3b3   :  { %2432 = vmatpush3.bf16.msra.mxu1 %v3124_v3 }
 0x3b4   :  { %2433 = vmatprep.subr.bf16.mxu1 %v3751_v10  ;;  %2452 = vmatpush3.bf16.msra.mxu0 %v3052_v53 }
 0x3b5   :  { %2453 = vmatprep.subr.bf16.mxu0 %v3751_v10 }
 0x3b7   :  { %2434 = vmatpush3.bf16.msra.mxu1 %v3130_v4 }
 0x3b8   :  { %2435 = vmatprep.subr.bf16.mxu1 %v3751_v10  ;;  %2454 = vmatpush3.bf16.msra.mxu0 %v3063_v55 }
 0x3b9   :  { %2455 = vmatprep.subr.bf16.mxu0 %v3751_v10 }
 0x3bb   :  { %2436 = vmatpush3.bf16.msra.mxu1 %v3136_v5 }
 0x3bc   :  { %2437 = vmatprep.subr.bf16.mxu1 %v3751_v10  ;;  %2456 = vmatpush3.bf16.msra.mxu0 %v3072_v57 }
 0x3bd   :  { %2457 = vmatprep.subr.bf16.mxu0 %v3751_v10 }
 0x3bf   :  { %2438 = vmatpush3.bf16.msra.mxu1 %v3142_v6 }
 0x3c0   :  { %2439 = vmatprep.subr.bf16.mxu1 %v3751_v10  ;;  %2458 = vmatpush3.bf16.msra.mxu0 %v3081_v59 }
 0x3c1   :  { %2459 = vmatprep.subr.bf16.mxu0 %v3751_v10 }
 0x3c3   :  { %2440 = vmatpush3.bf16.msra.mxu1 %v3148_v7 }
 0x3c4   :  { %2465 = vmatprep.subr.bf16.mxu1 %v3751_v10  ;;  %2460 = vmatpush3.bf16.msra.mxu0 %v3090_v61 }
 0x3c5   :  { %2485 = vmatprep.subr.bf16.mxu0 %v3751_v10 }
 0x3c6   :  { %2442 = vmatmul.mubr.bf16.vlgmr.msra.gmra.mxu1 %v1014_v27 }
 0x3c7   :  { %2466 = vmatpush3.bf16.msra.mxu1 %v3022_v38  ;;  %2481 = vmatprep.mubr.msk.bf16.mxu1 %vm2914_vm11, %v3751_v10 }
 0x3c8   :  { %2467 = vmatprep.subr.bf16.mxu1 %v3751_v10 }
 0x3cb   :  { %2468 = vmatpush3.bf16.msra.mxu1 %v3034_v45 }
 0x3cc   :  { %2469 = vmatprep.subr.bf16.mxu1 %v3751_v10 }
 0x3cf   :  { %2470 = vmatpush3.bf16.msra.mxu1 %v3046_v52 }
 0x3d0   :  { %2471 = vmatprep.subr.bf16.mxu1 %v3751_v10 }
 0x3d3   :  { %2472 = vmatpush3.bf16.msra.mxu1 %v3056_v54 }
 0x3d4   :  { %2473 = vmatprep.subr.bf16.mxu1 %v3751_v10 }
 0x3d7   :  { %2474 = vmatpush3.bf16.msra.mxu1 %v3067_v56 }
 0x3d8   :  { %2475 = vmatprep.subr.bf16.mxu1 %v3751_v10 }
 0x3db   :  { %2476 = vmatpush3.bf16.msra.mxu1 %v3077_v58 }
 0x3dc   :  { %2477 = vmatprep.subr.bf16.mxu1 %v3751_v10 }
 0x3df   :  { %2478 = vmatpush3.bf16.msra.mxu1 %v3085_v60 }
 0x3e0   :  { %2479 = vmatprep.subr.bf16.mxu1 %v3751_v10 }
 0x3e3   :  { %2480 = vmatpush3.bf16.msra.mxu1 %v3096_v62 }
 0x3e4   :  { %2505 = vmatprep.subr.bf16.mxu1 %v3751_v10 }
 0x466   :  { %v1049_v38 = vpop.f32.mrf.mxu1  ;;  %v1089_v45 = vpop.f32.mrf.mxu0 }
 0x467   :  { %v1095_v52 = vadd.f32 %v1049_v38, %v3207_v40  ;;  %v1102_v0 = vadd.f32 %v1089_v45, %v3212_v46 }
 0x468   :  { %v2403_v15 = vpop.f32.mrf.mxu1  ;;  %v2423_v20 = vpop.f32.mrf.mxu0 }
 0x469   :  { %v1940_v31 = vmul.f32 -1.442695, %v1095_v52  ;;  %v1941_v9 = vmul.f32 -1.442695, %v1102_v0  ;;  %v3503_v0 = vld [vmem:[#allocation3 + $0xb0] ss:$12 sps:$4 sm:$0xff]  }
 0x46a   :  { %v1052_v44 = vpop.f32.mrf.mxu1  ;;  %v1092_v47 = vpop.f32.mrf.mxu0 }
 0x46b   :  { %2789 = vpow2.f32 %v1940_v31 }
 0x46c   :  { %v2404_v49 = vpop.f32.mrf.mxu1  ;;  %v2424_v21 = vpop.f32.mrf.mxu0  ;;  %2791 = vpow2.f32 %v1941_v9  ;;  %v3515_v9 = vld [vmem:[#allocation3 + $0x98] ss:$12 sps:$4 sm:$0xff]  }
 0x478   :  { %v2790_v19 = vpop.eup %2789 }
 0x479   :  { %v1099_v18 = vadd.f32 1.0, %v2790_v19  ;;  %v2792_v29 = vpop.eup %2791  ;;  %v3519_v19 = vld [vmem:[#allocation3 + $0x90] ss:$12 sps:$4 sm:$0xff]  }
 0x47a   :  { %v1106_v12 = vadd.f32 1.0, %v2792_v29  ;;  %v3527_v29 = vld [vmem:[#allocation3 + $0x78] ss:$12 sps:$4 sm:$0xff]  }
 0x47b   :  { %2793 = vrcp.f32 %v1099_v18  ;;  %v3523_v18 = vld [vmem:[#allocation3 + $0x80] ss:$12 sps:$4 sm:$0xff]  }
 0x47c   :  { %2795 = vrcp.f32 %v1106_v12  ;;  %v3531_v12 = vld [vmem:[#allocation3 + $0x68] ss:$12 sps:$4 sm:$0xff]  }
 0x486   :  { %v1143_v30 = vpop.f32.mrf.mxu1 }
 0x487   :  { %v1144_v40 = vadd.f32 %v3236_v17, %v1143_v30  ;;  %v3535_v30 = vld [vmem:[#allocation3 + $0x60] ss:$12 sps:$4 sm:$0xff]  }
 0x488   :  { %v2794_v26 = vpop.eup %2793  ;;  %v2443_v25 = vpop.f32.mrf.mxu1 }
 0x489   :  { %v1149_v33 = vmul.f32 %v2794_v26, %v1144_v40  ;;  %v2796_v46 = vpop.eup %2795  ;;  %v3539_v40 = vld [vmem:[#allocation3 + $0x50] ss:$12 sps:$4 sm:$0xff]   ;;  %v3543_v26 = vld [vmem:[#allocation3 + $0x48] ss:$12 sps:$4 sm:$0xff]   ;;  %v3547_v25 = vld [vmem:[#allocation3 + $0x38] ss:$12 sps:$4 sm:$0xff]  }
 0x48a   :  { %v1146_v36 = vpop.f32.mrf.mxu1  ;;  %v1152_v34 = vsub.f32 1.0, %v2796_v46  ;;  %v1154_v24 = vmul.f32 %v2796_v46, %v3367_v42  ;;  %v3581_v46 = vld [vmem:[#allocation3 + $0x4c] ss:$12 sps:$4 sm:$0xff]  }
 0x48b   :  { %v1150_v16 = vadd.f32 %v1149_v33, %v3190_v23  ;;  %v3551_v33 = vld [vmem:[#allocation3 + $0x30] ss:$12 sps:$4 sm:$0xff]   ;;  %v3555_v36 = vld [vmem:[#allocation3 + $0x20] ss:$12 sps:$4 sm:$0xff]  }
 0x48c   :  { %v2444_v41 = vpop.f32.mrf.mxu1 }
 0x48d   :  { %2797 = vtanh.f32 %v1150_v16  ;;  %v3559_v16 = vld [vmem:[#allocation3 + $0x18] ss:$12 sps:$4 sm:$0xff]   ;;  %v3565_v41 = vld [vmem:[#allocation3] ss:$12 sps:$4 sm:$0xff]  }
 0x49a   :  { %v2798_v28 = vpop.eup %2797 }
 0x49b   :  { %v1153_v13 = vmul.f32 %v2798_v28, %v1152_v34  ;;  %v3585_v34 = vld [vmem:[#allocation3 + $0x34] ss:$12 sps:$4 sm:$0xff]   ;;  %v3589_v28 = vld [vmem:[#allocation3 + $0x1c] ss:$12 sps:$4 sm:$0xff]  }
 0x49d   :  { %v3430_v32 = vadd.f32 %v1154_v24, %v1153_v13  ;;  %v3593_v13 = vld [vmem:[#allocation3 + $0x4] ss:$12 sps:$4 sm:$0xff]  }
 0x49f   :  { %v1162_v27 = vpack.c.bf16 %v3430_v32, %v3430_v32 }
 0x4a1   :  { %2462 = vmatmul.mubr.bf16.vlgmr.msra.gmra.mxu0 %v1162_v27  ;;  %2482 = vmatmul.mubr.bf16.vlgmr.msra.gmra.mxu1 %v1162_v27 }
 0x4a2   :  { %2486 = vmatpush3.bf16.msra.mxu0 %v3100_v63  ;;  %2501 = vmatprep.mubr.msk.bf16.mxu0 %vm2914_vm11, %v3751_v10 }
 0x4a3   :  { %2487 = vmatprep.subr.bf16.mxu0 %v3751_v10  ;;  %2506 = vmatpush3.bf16.msra.mxu1 %v3020_v35  ;;  %v3470_v35 = vld [vmem:[#allocation3 + $0xac] ss:$12 sps:$4 sm:$0xff]  }
 0x4a4   :  { %2507 = vmatprep.subr.bf16.mxu1 %v3751_v10  ;;  %2521 = vmatprep.mubr.msk.bf16.mxu1 %vm2914_vm11, %v3751_v10 }
 0x4a6   :  { %2488 = vmatpush3.bf16.msra.mxu0 %v3108_v1 }
 0x4a7   :  { %2489 = vmatprep.subr.bf16.mxu0 %v3751_v10  ;;  %2508 = vmatpush3.bf16.msra.mxu1 %v3030_v43  ;;  %v3476_v43 = vld [vmem:[#allocation3 + $0x94] ss:$12 sps:$4 sm:$0xff]  }
 0x4a8   :  { %2509 = vmatprep.subr.bf16.mxu1 %v3751_v10 }
 0x4aa   :  { %2490 = vmatpush3.bf16.msra.mxu0 %v3118_v2 }
 0x4ab   :  { %2491 = vmatprep.subr.bf16.mxu0 %v3751_v10  ;;  %2510 = vmatpush3.bf16.msra.mxu1 %v3042_v50  ;;  %v3480_v50 = vld [vmem:[#allocation3 + $0x7c] ss:$12 sps:$4 sm:$0xff]  }
 0x4ac   :  { %2511 = vmatprep.subr.bf16.mxu1 %v3751_v10 }
 0x4ae   :  { %2492 = vmatpush3.bf16.msra.mxu0 %v3124_v3 }
 0x4af   :  { %2493 = vmatprep.subr.bf16.mxu0 %v3751_v10  ;;  %2512 = vmatpush3.bf16.msra.mxu1 %v3052_v53 }
 0x4b0   :  { %2513 = vmatprep.subr.bf16.mxu1 %v3751_v10 }
 0x4b2   :  { %2494 = vmatpush3.bf16.msra.mxu0 %v3130_v4 }
 0x4b3   :  { %2495 = vmatprep.subr.bf16.mxu0 %v3751_v10  ;;  %2514 = vmatpush3.bf16.msra.mxu1 %v3063_v55 }
 0x4b4   :  { %2515 = vmatprep.subr.bf16.mxu1 %v3751_v10 }
 0x4b6   :  { %2496 = vmatpush3.bf16.msra.mxu0 %v3136_v5 }
 0x4b7   :  { %2497 = vmatprep.subr.bf16.mxu0 %v3751_v10  ;;  %2516 = vmatpush3.bf16.msra.mxu1 %v3072_v57 }
 0x4b8   :  { %2517 = vmatprep.subr.bf16.mxu1 %v3751_v10 }
 0x4ba   :  { %2498 = vmatpush3.bf16.msra.mxu0 %v3142_v6 }
 0x4bb   :  { %2499 = vmatprep.subr.bf16.mxu0 %v3751_v10  ;;  %2518 = vmatpush3.bf16.msra.mxu1 %v3081_v59 }
 0x4bc   :  { %2519 = vmatprep.subr.bf16.mxu1 %v3751_v10 }
 0x4be   :  { %2500 = vmatpush3.bf16.msra.mxu0 %v3148_v7 }
 0x4bf   :  { %2525 = vmatprep.subr.bf16.mxu0 %v3751_v10  ;;  %2520 = vmatpush3.bf16.msra.mxu1 %v3090_v61 }
 0x4c0   :  { %2545 = vmatprep.subr.bf16.mxu1 %v3751_v10 }
 0x4c1   :  { %2502 = vmatmul.mubr.bf16.vlgmr.msra.gmra.mxu0 %v1162_v27 }
 0x4c2   :  { %2526 = vmatpush3.bf16.msra.mxu0 %v3470_v35  ;;  %2541 = vmatprep.mubr.msk.bf16.mxu0 %vm2914_vm11, %v3751_v10 }
 0x4c3   :  { %2527 = vmatprep.subr.bf16.mxu0 %v3751_v10 }
 0x4c6   :  { %2528 = vmatpush3.bf16.msra.mxu0 %v3476_v43 }
 0x4c7   :  { %2529 = vmatprep.subr.bf16.mxu0 %v3751_v10 }
 0x4ca   :  { %2530 = vmatpush3.bf16.msra.mxu0 %v3480_v50 }
 0x4cb   :  { %2531 = vmatprep.subr.bf16.mxu0 %v3751_v10 }
 0x4ce   :  { %2532 = vmatpush3.bf16.msra.mxu0 %v3056_v54 }
 0x4cf   :  { %2533 = vmatprep.subr.bf16.mxu0 %v3751_v10 }
 0x4d2   :  { %2534 = vmatpush3.bf16.msra.mxu0 %v3067_v56 }
 0x4d3   :  { %2535 = vmatprep.subr.bf16.mxu0 %v3751_v10 }
 0x4d6   :  { %2536 = vmatpush3.bf16.msra.mxu0 %v3077_v58 }
 0x4d7   :  { %2537 = vmatprep.subr.bf16.mxu0 %v3751_v10 }
 0x4da   :  { %2538 = vmatpush3.bf16.msra.mxu0 %v3085_v60 }
 0x4db   :  { %2539 = vmatprep.subr.bf16.mxu0 %v3751_v10 }
 0x4de   :  { %2540 = vmatpush3.bf16.msra.mxu0 %v3096_v62 }
 0x4df   :  { %2565 = vmatprep.subr.bf16.mxu0 %v3751_v10 }
 0x561   :  { %v1197_v53 = vpop.f32.mrf.mxu0  ;;  %v1237_v54 = vpop.f32.mrf.mxu1 }
 0x562   :  { %v1243_v55 = vadd.f32 %v1197_v53, %v3217_v51  ;;  %v1250_v60 = vadd.f32 %v1237_v54, %v3219_v8 }
 0x563   :  { %v2463_v57 = vpop.f32.mrf.mxu0  ;;  %v2483_v56 = vpop.f32.mrf.mxu1 }
 0x564   :  { %v1942_v59 = vmul.f32 -1.442695, %v1243_v55  ;;  %v1943_v2 = vmul.f32 -1.442695, %v1250_v60 }
 0x565   :  { %v1200_v61 = vpop.f32.mrf.mxu0  ;;  %v1240_v63 = vpop.f32.mrf.mxu1 }
 0x566   :  { %2799 = vpow2.f32 %v1942_v59 }
 0x567   :  { %v2464_v58 = vpop.f32.mrf.mxu0  ;;  %v2484_v1 = vpop.f32.mrf.mxu1  ;;  %2801 = vpow2.f32 %v1943_v2 }
 0x573   :  { %v2800_v3 = vpop.eup %2799 }
 0x574   :  { %v1247_v62 = vadd.f32 1.0, %v2800_v3  ;;  %v2802_v4 = vpop.eup %2801 }
 0x575   :  { %v1254_v5 = vadd.f32 1.0, %v2802_v4 }
 0x576   :  { %2803 = vrcp.f32 %v1247_v62 }
 0x577   :  { %2805 = vrcp.f32 %v1254_v5 }
 0x581   :  { %v1291_v6 = vpop.f32.mrf.mxu0 }
 0x582   :  { %v1292_v23 = vadd.f32 %v3236_v17, %v1291_v6 }
 0x583   :  { %v2804_v51 = vpop.eup %2803  ;;  %v2503_v42 = vpop.f32.mrf.mxu0 }
 0x584   :  { %v1297_v38 = vmul.f32 %v2804_v51, %v1292_v23  ;;  %v2806_v8 = vpop.eup %2805 }
 0x585   :  { %v1294_v45 = vpop.f32.mrf.mxu0  ;;  %v1300_v20 = vsub.f32 1.0, %v2806_v8  ;;  %v1302_v47 = vmul.f32 %v2806_v8, %v3430_v32 }
 0x586   :  { %v1298_v52 = vadd.f32 %v1297_v38, %v3205_v37  ;;  %v3509_v37 = vld [vmem:[#allocation3 + $0xa8] ss:$12 sps:$4 sm:$0xff]  }
 0x587   :  { %v2504_v15 = vpop.f32.mrf.mxu0 }
 0x588   :  { %2807 = vtanh.f32 %v1298_v52 }
 0x595   :  { %v2808_v31 = vpop.eup %2807 }
 0x596   :  { %v1301_v44 = vmul.f32 %v2808_v31, %v1300_v20 }
 0x598   :  { %v3499_v49 = vadd.f32 %v1302_v47, %v1301_v44 }
 0x59a   :  { %v1310_v21 = vpack.c.bf16 %v3499_v49, %v3499_v49 }
 0x59c   :  { %2522 = vmatmul.mubr.bf16.vlgmr.msra.gmra.mxu1 %v1310_v21  ;;  %2542 = vmatmul.mubr.bf16.vlgmr.msra.gmra.mxu0 %v1310_v21 }
 0x59d   :  { %2546 = vmatpush3.bf16.msra.mxu1 %v3503_v0  ;;  %2561 = vmatprep.mubr.msk.bf16.mxu1 %vm2914_vm11, %v3751_v10 }
 0x59e   :  { %2547 = vmatprep.subr.bf16.mxu1 %v3751_v10  ;;  %2566 = vmatpush3.bf16.msra.mxu0 %v3509_v37 }
 0x59f   :  { %2567 = vmatprep.subr.bf16.mxu0 %v3751_v10  ;;  %2581 = vmatprep.mubr.msk.bf16.mxu0 %vm2914_vm11, %v3751_v10 }
 0x5a1   :  { %2548 = vmatpush3.bf16.msra.mxu1 %v3515_v9 }
 0x5a2   :  { %2549 = vmatprep.subr.bf16.mxu1 %v3751_v10  ;;  %2568 = vmatpush3.bf16.msra.mxu0 %v3519_v19 }
 0x5a3   :  { %2569 = vmatprep.subr.bf16.mxu0 %v3751_v10 }
 0x5a5   :  { %2550 = vmatpush3.bf16.msra.mxu1 %v3523_v18 }
 0x5a6   :  { %2551 = vmatprep.subr.bf16.mxu1 %v3751_v10  ;;  %2570 = vmatpush3.bf16.msra.mxu0 %v3527_v29 }
 0x5a7   :  { %2571 = vmatprep.subr.bf16.mxu0 %v3751_v10 }
 0x5a9   :  { %2552 = vmatpush3.bf16.msra.mxu1 %v3531_v12 }
 0x5aa   :  { %2553 = vmatprep.subr.bf16.mxu1 %v3751_v10  ;;  %2572 = vmatpush3.bf16.msra.mxu0 %v3535_v30 }
 0x5ab   :  { %2573 = vmatprep.subr.bf16.mxu0 %v3751_v10 }
 0x5ad   :  { %2554 = vmatpush3.bf16.msra.mxu1 %v3539_v40 }
 0x5ae   :  { %2555 = vmatprep.subr.bf16.mxu1 %v3751_v10  ;;  %2574 = vmatpush3.bf16.msra.mxu0 %v3543_v26 }
 0x5af   :  { %2575 = vmatprep.subr.bf16.mxu0 %v3751_v10 }
 0x5b1   :  { %2556 = vmatpush3.bf16.msra.mxu1 %v3547_v25 }
 0x5b2   :  { %2557 = vmatprep.subr.bf16.mxu1 %v3751_v10  ;;  %2576 = vmatpush3.bf16.msra.mxu0 %v3551_v33 }
 0x5b3   :  { %2577 = vmatprep.subr.bf16.mxu0 %v3751_v10 }
 0x5b5   :  { %2558 = vmatpush3.bf16.msra.mxu1 %v3555_v36 }
 0x5b6   :  { %2559 = vmatprep.subr.bf16.mxu1 %v3751_v10  ;;  %2578 = vmatpush3.bf16.msra.mxu0 %v3559_v16 }
 0x5b7   :  { %2579 = vmatprep.subr.bf16.mxu0 %v3751_v10 }
 0x5b9   :  { %2560 = vmatpush3.bf16.msra.mxu1 %v3148_v7  ;;  %v3577_v7 = vld [vmem:[#allocation3 + $0x64] ss:$12 sps:$4 sm:$0xff]  }
 0x5ba   :  { %2585 = vmatprep.subr.bf16.mxu1 %v3751_v10  ;;  %2580 = vmatpush3.bf16.msra.mxu0 %v3565_v41 }
 0x5bb   :  { %2605 = vmatprep.subr.bf16.mxu0 %v3751_v10 }
 0x5bc   :  { %2562 = vmatmul.mubr.bf16.vlgmr.msra.gmra.mxu1 %v1310_v21 }
 0x5bd   :  { %2586 = vmatpush3.bf16.msra.mxu1 %v3470_v35  ;;  %2601 = vmatprep.mubr.msk.bf16.mxu1 %vm2914_vm11, %v3751_v10 }
 0x5be   :  { %2587 = vmatprep.subr.bf16.mxu1 %v3751_v10 }
 0x5c1   :  { %2588 = vmatpush3.bf16.msra.mxu1 %v3476_v43 }
 0x5c2   :  { %2589 = vmatprep.subr.bf16.mxu1 %v3751_v10 }
 0x5c5   :  { %2590 = vmatpush3.bf16.msra.mxu1 %v3480_v50 }
 0x5c6   :  { %2591 = vmatprep.subr.bf16.mxu1 %v3751_v10 }
 0x5c9   :  { %2592 = vmatpush3.bf16.msra.mxu1 %v3577_v7 }
 0x5ca   :  { %2593 = vmatprep.subr.bf16.mxu1 %v3751_v10 }
 0x5cd   :  { %2594 = vmatpush3.bf16.msra.mxu1 %v3581_v46 }
 0x5ce   :  { %2595 = vmatprep.subr.bf16.mxu1 %v3751_v10 }
 0x5d1   :  { %2596 = vmatpush3.bf16.msra.mxu1 %v3585_v34 }
 0x5d2   :  { %2597 = vmatprep.subr.bf16.mxu1 %v3751_v10 }
 0x5d5   :  { %2598 = vmatpush3.bf16.msra.mxu1 %v3589_v28 }
 0x5d6   :  { %2599 = vmatprep.subr.bf16.mxu1 %v3751_v10 }
 0x5d9   :  { %2600 = vmatpush3.bf16.msra.mxu1 %v3593_v13 }
 0x5da   :  { %2625 = vmatprep.subr.bf16.mxu1 %v3751_v10 }
 0x65c   :  { %v1345_v24 = vpop.f32.mrf.mxu1  ;;  %v1385_v32 = vpop.f32.mrf.mxu0 }
 0x65d   :  { %v1391_v27 = vadd.f32 %v1345_v24, %v3221_v11  ;;  %v1398_v63 = vadd.f32 %v1385_v32, %v3223_v14  ;;  %v3753_v32 = vld [vmem:[#allocation9_spill] sm:$0xff] }
 0x65e   :  { %v2523_v53 = vpop.f32.mrf.mxu1  ;;  %v2543_v54 = vpop.f32.mrf.mxu0 }
 0x65f   :  { %v1944_v55 = vmul.f32 -1.442695, %v1391_v27  ;;  %v1945_v58 = vmul.f32 -1.442695, %v1398_v63 }
 0x660   :  { %v1348_v57 = vpop.f32.mrf.mxu1  ;;  %v1388_v56 = vpop.f32.mrf.mxu0 }
 0x661   :  { %2809 = vpow2.f32 %v1944_v55 }
 0x662   :  { %v2524_v59 = vpop.f32.mrf.mxu1  ;;  %v2544_v61 = vpop.f32.mrf.mxu0  ;;  %2811 = vpow2.f32 %v1945_v58  ;;  %v2758_v58 = vld [vmem:[%s3742_s5] sm:$0xff]  }
 0x66e   :  { %v2810_v1 = vpop.eup %2809 }
 0x66f   :  { %v1395_v60 = vadd.f32 1.0, %v2810_v1  ;;  %v2812_v2 = vpop.eup %2811 }
 0x670   :  { %v1402_v3 = vadd.f32 1.0, %v2812_v2  ;;  %v3754_v2 = vld [vmem:[#allocation12_spill] sm:$0xff] }
 0x671   :  { %2813 = vrcp.f32 %v1395_v60 }
 0x672   :  { %2815 = vrcp.f32 %v1402_v3 }
 0x67c   :  { %v1439_v62 = vpop.f32.mrf.mxu1 }
 0x67d   :  { %v1440_v11 = vadd.f32 %v3236_v17, %v1439_v62 }
 0x67e   :  { %v2814_v4 = vpop.eup %2813  ;;  %v2563_v5 = vpop.f32.mrf.mxu1 }
 0x67f   :  { %v1445_v6 = vmul.f32 %v2814_v4, %v1440_v11  ;;  %v2816_v14 = vpop.eup %2815 }
 0x680   :  { %v1442_v23 = vpop.f32.mrf.mxu1  ;;  %v1448_v38 = vsub.f32 1.0, %v2816_v14  ;;  %v1450_v15 = vmul.f32 %v2816_v14, %v3499_v49 }
 0x681   :  { %v1446_v51 = vadd.f32 %v1445_v6, %v3215_v48  ;;  %v3638_v48 = vld [vmem:[#allocation3 + $0x8] ss:$12 sps:$4 sm:$0xff]  }
 0x682   :  { %v2564_v42 = vpop.f32.mrf.mxu1 }
 0x683   :  { %2817 = vtanh.f32 %v1446_v51 }
 0x690   :  { %v2818_v45 = vpop.eup %2817 }
 0x691   :  { %v1449_v52 = vmul.f32 %v2818_v45, %v1448_v38 }
 0x693   :  { %v3602_v8 = vadd.f32 %v1450_v15, %v1449_v52 }
 0x695   :  { %v1458_v17 = vpack.c.bf16 %v3602_v8, %v3602_v8 }
 0x697   :  { %2582 = vmatmul.mubr.bf16.vlgmr.msra.gmra.mxu0 %v1458_v17  ;;  %2602 = vmatmul.mubr.bf16.vlgmr.msra.gmra.mxu1 %v1458_v17 }
 0x698   :  { %2606 = vmatpush3.bf16.msra.mxu0 %v3503_v0  ;;  %2621 = vmatprep.mubr.msk.bf16.mxu0 %vm2914_vm11, %v3751_v10 }
 0x699   :  { %2607 = vmatprep.subr.bf16.mxu0 %v3751_v10  ;;  %2626 = vmatpush3.bf16.msra.mxu1 %v3509_v37 }
 0x69a   :  { %2627 = vmatprep.subr.bf16.mxu1 %v3751_v10  ;;  %2641 = vmatprep.mubr.msk.bf16.mxu1 %vm2914_vm11, %v3751_v10 }
 0x69c   :  { %2608 = vmatpush3.bf16.msra.mxu0 %v3515_v9 }
 0x69d   :  { %2609 = vmatprep.subr.bf16.mxu0 %v3751_v10  ;;  %2628 = vmatpush3.bf16.msra.mxu1 %v3519_v19  ;;  %v3752_v19 = vld [vmem:[#allocation11_spill] sm:$0xff] }
 0x69e   :  { %2629 = vmatprep.subr.bf16.mxu1 %v3751_v10 }
 0x6a0   :  { %2610 = vmatpush3.bf16.msra.mxu0 %v3523_v18 }
 0x6a1   :  { %2611 = vmatprep.subr.bf16.mxu0 %v3751_v10  ;;  %2630 = vmatpush3.bf16.msra.mxu1 %v3527_v29 }
 0x6a2   :  { %2631 = vmatprep.subr.bf16.mxu1 %v3751_v10 }
 0x6a4   :  { %2612 = vmatpush3.bf16.msra.mxu0 %v3531_v12 }
 0x6a5   :  { %2613 = vmatprep.subr.bf16.mxu0 %v3751_v10  ;;  %2632 = vmatpush3.bf16.msra.mxu1 %v3535_v30 }
 0x6a6   :  { %2633 = vmatprep.subr.bf16.mxu1 %v3751_v10 }
 0x6a8   :  { %2614 = vmatpush3.bf16.msra.mxu0 %v3539_v40 }
 0x6a9   :  { %2615 = vmatprep.subr.bf16.mxu0 %v3751_v10  ;;  %2634 = vmatpush3.bf16.msra.mxu1 %v3543_v26 }
 0x6aa   :  { %2635 = vmatprep.subr.bf16.mxu1 %v3751_v10 }
 0x6ac   :  { %2616 = vmatpush3.bf16.msra.mxu0 %v3547_v25 }
 0x6ad   :  { %2617 = vmatprep.subr.bf16.mxu0 %v3751_v10  ;;  %2636 = vmatpush3.bf16.msra.mxu1 %v3551_v33 }
 0x6ae   :  { %2637 = vmatprep.subr.bf16.mxu1 %v3751_v10 }
 0x6b0   :  { %2618 = vmatpush3.bf16.msra.mxu0 %v3555_v36 }
 0x6b1   :  { %2619 = vmatprep.subr.bf16.mxu0 %v3751_v10  ;;  %2638 = vmatpush3.bf16.msra.mxu1 %v3559_v16 }
 0x6b2   :  { %2639 = vmatprep.subr.bf16.mxu1 %v3751_v10 }
 0x6b4   :  { %2620 = vmatpush3.bf16.msra.mxu0 %v3638_v48 }
 0x6b5   :  { %2645 = vmatprep.subr.bf16.mxu0 %v3751_v10  ;;  %2640 = vmatpush3.bf16.msra.mxu1 %v3565_v41 }
 0x6b6   :  { %2665 = vmatprep.subr.bf16.mxu1 %v3751_v10 }
 0x6b7   :  { %2622 = vmatmul.mubr.bf16.vlgmr.msra.gmra.mxu0 %v1458_v17 }
 0x6b8   :  { %2646 = vmatpush3.bf16.msra.mxu0 %v3470_v35  ;;  %2661 = vmatprep.mubr.msk.bf16.mxu0 %vm2914_vm11, %v3751_v10 }
 0x6b9   :  { %2647 = vmatprep.subr.bf16.mxu0 %v3751_v10 }
 0x6bc   :  { %2648 = vmatpush3.bf16.msra.mxu0 %v3476_v43 }
 0x6bd   :  { %2649 = vmatprep.subr.bf16.mxu0 %v3751_v10 }
 0x6c0   :  { %2650 = vmatpush3.bf16.msra.mxu0 %v3480_v50 }
 0x6c1   :  { %2651 = vmatprep.subr.bf16.mxu0 %v3751_v10 }
 0x6c4   :  { %2652 = vmatpush3.bf16.msra.mxu0 %v3577_v7 }
 0x6c5   :  { %2653 = vmatprep.subr.bf16.mxu0 %v3751_v10 }
 0x6c8   :  { %2654 = vmatpush3.bf16.msra.mxu0 %v3581_v46 }
 0x6c9   :  { %2655 = vmatprep.subr.bf16.mxu0 %v3751_v10 }
 0x6cc   :  { %2656 = vmatpush3.bf16.msra.mxu0 %v3585_v34 }
 0x6cd   :  { %2657 = vmatprep.subr.bf16.mxu0 %v3751_v10 }
 0x6d0   :  { %2658 = vmatpush3.bf16.msra.mxu0 %v3589_v28 }
 0x6d1   :  { %2659 = vmatprep.subr.bf16.mxu0 %v3751_v10 }
 0x6d4   :  { %2660 = vmatpush3.bf16.msra.mxu0 %v3593_v13 }
 0x6d5   :  { %2685 = vmatprep.subr.bf16.mxu0 %v3751_v10 }
 0x757   :  { %v1493_v35 = vpop.f32.mrf.mxu0  ;;  %v1533_v43 = vpop.f32.mrf.mxu1 }
 0x758   :  { %v1539_v50 = vadd.f32 %v1493_v35, %v3225_v22  ;;  %v1546_v29 = vadd.f32 %v1533_v43, %v3752_v19  ;;  %v3667_v22 = vld [vmem:[%s3741_s4] ss:$0 sm:$0xff] }
 0x759   :  { %v2583_v20 = vpop.f32.mrf.mxu0  ;;  %v2603_v31 = vpop.f32.mrf.mxu1 }
 0x75a   :  { %v1946_v44 = vmul.f32 -1.442695, %v1539_v50  ;;  %v1947_v30 = vmul.f32 -1.442695, %v1546_v29  ;;  %v3755_v50 = vld [vmem:[#allocation10_spill] sm:$0xff] }
 0x75b   :  { %v1496_v47 = vpop.f32.mrf.mxu0  ;;  %v1536_v49 = vpop.f32.mrf.mxu1  ;;  %v1950_v29 = vld [vmem:[%s3743_s6] ss:$0 sm:$0xff] }
 0x75c   :  { %2819 = vpow2.f32 %v1946_v44 }
 0x75d   :  { %v2584_v21 = vpop.f32.mrf.mxu0  ;;  %v2604_v37 = vpop.f32.mrf.mxu1  ;;  %2821 = vpow2.f32 %v1947_v30 }
 0x769   :  { %v2820_v26 = vpop.eup %2819 }
 0x76a   :  { %v1543_v33 = vadd.f32 1.0, %v2820_v26  ;;  %v2822_v16 = vpop.eup %2821 }
 0x76b   :  { %v1550_v41 = vadd.f32 1.0, %v2822_v16 }
 0x76c   :  { %2823 = vrcp.f32 %v1543_v33 }
 0x76d   :  { %2825 = vrcp.f32 %v1550_v41 }
 0x777   :  { %v1587_v7 = vpop.f32.mrf.mxu0 }
 0x778   :  { %v1588_v46 = vadd.f32 %v3667_v22, %v1587_v7 }
 0x779   :  { %v2824_v34 = vpop.eup %2823  ;;  %v2623_v28 = vpop.f32.mrf.mxu0 }
 0x77a   :  { %v1593_v13 = vmul.f32 %v2824_v34, %v1588_v46  ;;  %v2826_v54 = vpop.eup %2825 }
 0x77b   :  { %v1590_v24 = vpop.f32.mrf.mxu0  ;;  %v1596_v55 = vsub.f32 1.0, %v2826_v54  ;;  %v1598_v59 = vmul.f32 %v2826_v54, %v3602_v8 }
 0x77c   :  { %v1594_v27 = vadd.f32 %v1593_v13, %v3753_v32 }
 0x77d   :  { %v2624_v53 = vpop.f32.mrf.mxu0 }
 0x77e   :  { %2827 = vtanh.f32 %v1594_v27 }
 0x78b   :  { %v2828_v57 = vpop.eup %2827 }
 0x78c   :  { %v1597_v56 = vmul.f32 %v2828_v57, %v1596_v55 }
 0x78e   :  { %v3672_v61 = vadd.f32 %v1598_v59, %v1597_v56 }
 0x790   :  { %v1606_v63 = vpack.c.bf16 %v3672_v61, %v3672_v61 }
 0x792   :  { %2642 = vmatmul.mubr.bf16.vlgmr.msra.gmra.mxu1 %v1606_v63  ;;  %2662 = vmatmul.mubr.bf16.vlgmr.msra.gmra.mxu0 %v1606_v63 }
 0x793   :  { %2666 = vmatpush3.bf16.msra.mxu1 %v3503_v0  ;;  %2681 = vmatprep.mubr.msk.bf16.mxu1 %vm2914_vm11, %v3751_v10  ;;  %v2751_v0 = vld [vmem:[%s3742_s5 + $0x38] sm:$0xff]  }
 0x794   :  { %2667 = vmatprep.subr.bf16.mxu1 %v3751_v10  ;;  %2701 = vmatprep.mubr.msk.bf16.mxu0 %vm2914_vm11, %v3751_v10 }
 0x795   :  { %2686 = vmatpush3.bf16.msra.mxu0 %v2751_v0 }
 0x796   :  { %2687 = vmatprep.subr.bf16.mxu0 %v3751_v10 }
 0x797   :  { %2668 = vmatpush3.bf16.msra.mxu1 %v3515_v9  ;;  %v2752_v9 = vld [vmem:[%s3742_s5 + $0x30] sm:$0xff]  }
 0x798   :  { %2669 = vmatprep.subr.bf16.mxu1 %v3751_v10 }
 0x799   :  { %2688 = vmatpush3.bf16.msra.mxu0 %v2752_v9 }
 0x79a   :  { %2689 = vmatprep.subr.bf16.mxu0 %v3751_v10 }
 0x79b   :  { %2670 = vmatpush3.bf16.msra.mxu1 %v3523_v18  ;;  %v2753_v18 = vld [vmem:[%s3742_s5 + $0x28] sm:$0xff]  }
 0x79c   :  { %2671 = vmatprep.subr.bf16.mxu1 %v3751_v10 }
 0x79d   :  { %2690 = vmatpush3.bf16.msra.mxu0 %v2753_v18 }
 0x79e   :  { %2691 = vmatprep.subr.bf16.mxu0 %v3751_v10 }
 0x79f   :  { %2672 = vmatpush3.bf16.msra.mxu1 %v3531_v12  ;;  %v2754_v12 = vld [vmem:[%s3742_s5 + $0x20] sm:$0xff]  }
 0x7a0   :  { %2673 = vmatprep.subr.bf16.mxu1 %v3751_v10 }
 0x7a1   :  { %2692 = vmatpush3.bf16.msra.mxu0 %v2754_v12 }
 0x7a2   :  { %2693 = vmatprep.subr.bf16.mxu0 %v3751_v10 }
 0x7a3   :  { %2674 = vmatpush3.bf16.msra.mxu1 %v3539_v40  ;;  %v2755_v40 = vld [vmem:[%s3742_s5 + $0x18] sm:$0xff]  }
 0x7a4   :  { %2675 = vmatprep.subr.bf16.mxu1 %v3751_v10 }
 0x7a5   :  { %2694 = vmatpush3.bf16.msra.mxu0 %v2755_v40 }
 0x7a6   :  { %2695 = vmatprep.subr.bf16.mxu0 %v3751_v10 }
 0x7a7   :  { %2676 = vmatpush3.bf16.msra.mxu1 %v3547_v25  ;;  %v2756_v25 = vld [vmem:[%s3742_s5 + $0x10] sm:$0xff]  }
 0x7a8   :  { %2677 = vmatprep.subr.bf16.mxu1 %v3751_v10 }
 0x7a9   :  { %2696 = vmatpush3.bf16.msra.mxu0 %v2756_v25 }
 0x7aa   :  { %2697 = vmatprep.subr.bf16.mxu0 %v3751_v10 }
 0x7ab   :  { %2678 = vmatpush3.bf16.msra.mxu1 %v3555_v36  ;;  %v2757_v36 = vld [vmem:[%s3742_s5 + $0x8] sm:$0xff]  }
 0x7ac   :  { %2679 = vmatprep.subr.bf16.mxu1 %v3751_v10 }
 0x7ad   :  { %2698 = vmatpush3.bf16.msra.mxu0 %v2757_v36 }
 0x7ae   :  { %2699 = vmatprep.subr.bf16.mxu0 %v3751_v10 }
 0x7af   :  { %2680 = vmatpush3.bf16.msra.mxu1 %v3638_v48 }
 0x7b1   :  { %2700 = vmatpush3.bf16.msra.mxu0 %v2758_v58 }
 0x7b2   :  { %2682 = vmatmul.mubr.bf16.vlgmr.msra.gmra.mxu1 %v1606_v63 }
 0x852   :  { %v1641_v1 = vpop.f32.mrf.mxu1  ;;  %v1681_v60 = vpop.f32.mrf.mxu0 }
 0x853   :  { %v1687_v3 = vadd.f32 %v1641_v1, %v3754_v2  ;;  %v1694_v42 = vadd.f32 %v1681_v60, %v3231_v39 }
 0x854   :  { %v2643_v62 = vpop.f32.mrf.mxu1  ;;  %v2663_v11 = vpop.f32.mrf.mxu0 }
 0x855   :  { %v1948_v4 = vmul.f32 -1.442695, %v1687_v3  ;;  %v1949_v14 = vmul.f32 -1.442695, %v1694_v42 }
 0x856   :  { %v1644_v5 = vpop.f32.mrf.mxu1  ;;  %v1684_v6 = vpop.f32.mrf.mxu0 }
 0x857   :  { %2829 = vpow2.f32 %v1948_v4 }
 0x858   :  { %v2644_v23 = vpop.f32.mrf.mxu1  ;;  %v2664_v51 = vpop.f32.mrf.mxu0  ;;  %2831 = vpow2.f32 %v1949_v14 }
 0x864   :  { %v2830_v38 = vpop.eup %2829 }
 0x865   :  { %v1691_v45 = vadd.f32 1.0, %v2830_v38  ;;  %v2832_v10 = vpop.eup %2831 }
 0x866   :  { %v1698_v52 = vadd.f32 1.0, %v2832_v10 }
 0x867   :  { %2833 = vrcp.f32 %v1691_v45 }
 0x868   :  { %2835 = vrcp.f32 %v1698_v52 }
 0x872   :  { %v1735_v15 = vpop.f32.mrf.mxu1 }
 0x873   :  { %v1736_v8 = vadd.f32 %v3667_v22, %v1735_v15 }
 0x874   :  { %v2834_v17 = vpop.eup %2833  ;;  %v2683_v48 = vpop.f32.mrf.mxu1 }
 0x875   :  { %v1741_v35 = vmul.f32 %v2834_v17, %v1736_v8  ;;  %v2836_v39 = vpop.eup %2835 }
 0x876   :  { %v1738_v43 = vpop.f32.mrf.mxu1  ;;  %v1744_v44 = vsub.f32 1.0, %v2836_v39  ;;  %v1746_v21 = vmul.f32 %v2836_v39, %v3672_v61 }
 0x877   :  { %v1742_v20 = vadd.f32 %v1741_v35, %v3755_v50 }
 0x878   :  { %v2684_v31 = vpop.f32.mrf.mxu1 }
 0x879   :  { %2837 = vtanh.f32 %v1742_v20 }
 0x886   :  { %v2838_v47 = vpop.eup %2837 }
 0x887   :  { %v1745_v49 = vmul.f32 %v2838_v47, %v1744_v44 }
 0x889   :  { %v1747_v37 = vadd.f32 %v1746_v21, %v1745_v49 }
 0x88b   :  { %v1748_v19 = vpack.c.bf16 %v1747_v37, %v1747_v37 }
 0x88d   :  { %2702 = vmatmul.mubr.bf16.vlgmr.msra.gmra.mxu0 %v1748_v19 }
 0x94d   :  { %v1854_v30 = vpop.f32.mrf.mxu0 }
 0x94e   :  { %v1855_v26 = vadd.f32 %v1950_v29, %v1854_v30 }
 0x94f   :  { %v2703_v33 = vpop.f32.mrf.mxu0 }
 0x950   :  { %1861 = vst.msk [vmem:[#allocation6] sm:$0xff] %vm1860_vm12, %v1855_v26 }
 0x951   :  { %v1857_v16 = vpop.f32.mrf.mxu0 }
 0x952   :  { %2895 = shalt.err (!%p2892_p9)
}
 0x953   :  { %1871 = dma.vmem_to_hbm [thread:$0]  %s1869_s13, 128, %s3744_s7, [#allocation5]   ;;  %v2704_v41 = vpop.f32.mrf.mxu0 }
 0x954   :  { %2906 = dma.done.wait [#allocation5], 128  }
 0x955   :  { %2907 = vsyncadd [#allocation5], 4294967168 }
 0x956   :  { %1875 = vsyncpa [#allocation4], 1 }
 0x957   :  { %1876 = vsyncpa [#allocation5], 1 }

</bundles_post_ra>
